<compile_context>
chip_gen: v6e
topology: v6e:2x2x1
jax: 0.10.0
libtpu: 0.0.40
codegen_flags: <defaults>
</compile_context>

<pallas_src>
import functools

import jax
import jax.numpy as jnp
from jax.experimental import pallas as pl
from jax.experimental.pallas import tpu as pltpu


def _pow(x, p):
    """x**p with a square-and-multiply fast path for positive integer p."""
    p = float(p)
    if p == 1.0:
        return x
    if p == int(p) and p > 0:
        n = int(p)
        result, base = None, x
        while n:
            if n & 1:
                result = base if result is None else result * base
            n >>= 1
            if n:
                base = base * base
        return result
    return jnp.power(x, p)


def _tal_kernel(ps_ref, pb_ref, anc_ref, lab_ref, gtb_ref, mg_ref,
                tl_ref, tb_ref, ts_ref, fg_ref, tgi_ref,
                *, topk, nc, n_gt, na, alpha, beta, eps, lane_bits):
    f32 = jnp.float32
    bf16 = jnp.bfloat16

    ps_t = ps_ref[0]          # (nc, na)  bf16 pd_scores transposed
    pb_t = pb_ref[0]          # (9, na)   f32  pd_bboxes (poly) transposed
    anc = anc_ref[...]        # (2, na)   f32  anchor centers transposed
    lab = lab_ref[0]          # (n_gt, 1) int32 gt labels
    gtb = gtb_ref[0]          # (n_gt, 9) f32  gt poly boxes
    mg = mg_ref[0]            # (n_gt, 1) f32  mask_gt (0/1)

    # ---------------- bbox_scores: pd_scores gathered at gt class (MXU) ------
    cls_iota = jax.lax.broadcasted_iota(jnp.int32, (n_gt, nc), 1)
    gt_onehot = (cls_iota == lab).astype(bf16)                       # exact bf16
    bbox_scores = jnp.dot(gt_onehot, ps_t,
                          preferred_element_type=f32)                # (n_gt, na)

    # ---------------- overlaps: IoU(gt, pred) matrix --------------------------
    # TODO(synk): obb_iou (oriented-poly IoU) is not defined in the reference
    # snippet; using axis-aligned-bounding-box IoU of the polygon corners as a
    # deterministic stand-in with identical shapes/clamping semantics.
    px0, px1, px2, px3 = pb_t[0:1, :], pb_t[2:3, :], pb_t[4:5, :], pb_t[6:7, :]
    py0, py1, py2, py3 = pb_t[1:2, :], pb_t[3:4, :], pb_t[5:6, :], pb_t[7:8, :]
    pd_x1 = jnp.minimum(jnp.minimum(px0, px1), jnp.minimum(px2, px3))  # (1, na)
    pd_x2 = jnp.maximum(jnp.maximum(px0, px1), jnp.maximum(px2, px3))
    pd_y1 = jnp.minimum(jnp.minimum(py0, py1), jnp.minimum(py2, py3))
    pd_y2 = jnp.maximum(jnp.maximum(py0, py1), jnp.maximum(py2, py3))

    gx0, gx1, gx2, gx3 = gtb[:, 0:1], gtb[:, 2:3], gtb[:, 4:5], gtb[:, 6:7]
    gy0, gy1, gy2, gy3 = gtb[:, 1:2], gtb[:, 3:4], gtb[:, 5:6], gtb[:, 7:8]
    gt_x1 = jnp.minimum(jnp.minimum(gx0, gx1), jnp.minimum(gx2, gx3))  # (n_gt,1)
    gt_x2 = jnp.maximum(jnp.maximum(gx0, gx1), jnp.maximum(gx2, gx3))
    gt_y1 = jnp.minimum(jnp.minimum(gy0, gy1), jnp.minimum(gy2, gy3))
    gt_y2 = jnp.maximum(jnp.maximum(gy0, gy1), jnp.maximum(gy2, gy3))

    iw = jnp.maximum(jnp.minimum(gt_x2, pd_x2) - jnp.maximum(gt_x1, pd_x1), 0.0)
    ih = jnp.maximum(jnp.minimum(gt_y2, pd_y2) - jnp.maximum(gt_y1, pd_y1), 0.0)
    inter = iw * ih                                                   # (n_gt, na)
    area_g = (gt_x2 - gt_x1) * (gt_y2 - gt_y1)                        # (n_gt, 1)
    area_p = (pd_x2 - pd_x1) * (pd_y2 - pd_y1)                        # (1, na)
    union = (area_g + eps) + area_p - inter
    overlaps = jnp.maximum(inter / union, 0.0)                        # (n_gt, na)

    # alpha=1 fast path, beta=6 via 3 multiplies (square chain).
    align_metric = _pow(bbox_scores, alpha) * _pow(overlaps, beta)    # (n_gt, na)

    # ---------------- select_candidates_in_gts (point strictly inside quad) --
    # from_X . vec = (c - X) . vec = (c.vec) - (X.vec): the eight per-corner dot
    # products collapse to range tests of Pw = c.vec_w / Ph = c.vec_h against
    # per-gt scalar bounds (boolean-algebra refactor of the reference test).
    cx, cy = anc[0:1, :], anc[1:2, :]                                 # (1, na)
    lt, lb = gtb[:, 0:2], gtb[:, 2:4]                                 # (n_gt, 2)
    rb, rt = gtb[:, 4:6], gtb[:, 6:8]
    vw = rt - lt
    vh = lb - lt

    def rowdot(a, b):                                                 # (n_gt, 1)
        return jnp.sum(a * b, axis=-1, keepdims=True)

    pw = cx * vw[:, 0:1] + cy * vw[:, 1:2]                            # (n_gt, na)
    ph = cx * vh[:, 0:1] + cy * vh[:, 1:2]
    lo_w = jnp.maximum(rowdot(lt, vw), rowdot(lb, vw)) + eps          # (n_gt, 1)
    hi_w = jnp.minimum(rowdot(rb, vw), rowdot(rt, vw)) - eps
    lo_h = jnp.maximum(rowdot(lt, vh), rowdot(rt, vh)) + eps
    hi_h = jnp.minimum(rowdot(lb, vh), rowdot(rb, vh)) - eps
    in_gts = (pw > lo_w) & (pw < hi_w) & (ph > lo_h) & (ph < hi_h)    # bool

    # ---------------- select_topk_candidates ---------------------------------
    # Invariant: metrics >= 0 (scores and IoU are non-negative), so the f32 bit
    # pattern read as int32 is order-preserving.  Build a per-row-UNIQUE key:
    # value bits with the low `lane_bits` bits replaced by the inverted lane
    # index.  One max-reduction per top-k step then selects exactly one lane
    # (value first, earlier lane wins ties / sub-quantum near-ties), which also
    # preserves the "row max is 0" behavior (one lane knocked out per step).
    metrics = jnp.where(in_gts, align_metric, 0.0)                    # (n_gt, na)
    lane_iota = jax.lax.broadcasted_iota(jnp.int32, (n_gt, na), 1)
    inv_lane = jnp.int32(na - 1) - lane_iota
    vbits = pltpu.bitcast(metrics, jnp.int32)
    keys = (vbits & jnp.int32(-(1 << lane_bits))) | inv_lane
    in_topk = jnp.zeros((n_gt, na), jnp.bool_)
    for _ in range(topk):
        best = jnp.max(keys, axis=-1, keepdims=True)                  # (n_gt, 1)
        hit = keys == best                                            # 1 per row
        in_topk = in_topk | hit
        keys = jnp.where(hit, jnp.int32(-1), keys)

    # mask_gt row-gating (reference dup-count rule) + in-gts gating, single AND.
    mask_pos = jnp.where(in_topk & in_gts & (mg > 0.0), 1.0, 0.0)     # (n_gt, na)

    # ---------------- select_highest_overlaps --------------------------------
    gt_iota = jax.lax.broadcasted_iota(jnp.int32, (n_gt, na), 0)
    fg = jnp.sum(mask_pos, axis=0, keepdims=True)                     # (1, na)
    ov_max = jnp.max(overlaps, axis=0, keepdims=True)
    first_ov = jnp.min(jnp.where(overlaps == ov_max, gt_iota, n_gt),
                       axis=0, keepdims=True)
    is_max_ov = jnp.where(gt_iota == first_ov, 1.0, 0.0)
    mask_pos = jnp.where(fg > 1.0, is_max_ov, mask_pos)
    fg = jnp.sum(mask_pos, axis=0, keepdims=True)                     # (1, na)

    tgt_idx = jnp.min(jnp.where(mask_pos > 0.0, gt_iota, n_gt),
                      axis=0, keepdims=True)
    tgt_idx = jnp.where(fg > 0.0, tgt_idx, 0)                         # (1, na) i32
    sel = jnp.where(gt_iota == tgt_idx, 1.0, 0.0)                     # (n_gt, na)

    # ---------------- get_targets + score normalization (lane-dense) ---------
    t_lab = jnp.sum(sel * lab.astype(f32), axis=0, keepdims=True)     # (1, na)
    # Target boxes gathered as (9, na) so the store is lane-dense; kept f32
    # (bf16 would quantize pixel coordinates of the regression targets).
    t_box = jax.lax.dot_general(gtb, sel, (((0,), (0,)), ((), ())),
                                preferred_element_type=f32)           # (9, na)

    am = align_metric * mask_pos
    pos_am = jnp.max(am, axis=-1, keepdims=True)                      # (n_gt, 1)
    pos_ov = jnp.max(overlaps * mask_pos, axis=-1, keepdims=True)     # (n_gt, 1)
    norm = jnp.max(am * (pos_ov / (pos_am + eps)), axis=0, keepdims=True)
    scale = jnp.where(fg > 0.0, norm, 0.0)                            # (1, na)

    t_scores = jax.lax.dot_general(gt_onehot, (sel * scale).astype(bf16),
                                   (((0,), (0,)), ((), ())),
                                   preferred_element_type=f32)        # (nc, na)

    tl_ref[0] = t_lab.astype(jnp.int32)
    tb_ref[0] = t_box
    ts_ref[0] = t_scores
    fg_ref[0] = fg
    tgi_ref[0] = tgt_idx


def task_aligned_assigner(pd_scores, pd_bboxes, anc_points, gt_labels,
                          gt_bboxes, mask_gt,
                          *, topk=13, num_classes=80, alpha=1.0, beta=6.0,
                          eps=1e-9):
    """Pallas TPU implementation of TaskAlignedAssigner.forward (no-grad)."""
    bs, na, nc = pd_scores.shape
    n_gt = gt_bboxes.shape[1]
    assert nc == num_classes

    # --- glue: anchors on the lane dim, (8,128) padding -----------------------
    na_pad = ((na + 127) // 128) * 128
    ng_pad = ((n_gt + 7) // 8) * 8
    lane_bits = max(1, int(na_pad - 1).bit_length())

    ps_t = jnp.transpose(pd_scores, (0, 2, 1)).astype(jnp.bfloat16)   # (bs,nc,na)
    pb_t = jnp.transpose(pd_bboxes.astype(jnp.float32), (0, 2, 1))    # (bs,9,na)
    anc_t = jnp.transpose(anc_points.astype(jnp.float32), (1, 0))     # (2,na)
    if na_pad != na:
        pa = na_pad - na
        ps_t = jnp.pad(ps_t, ((0, 0), (0, 0), (0, pa)))
        pb_t = jnp.pad(pb_t, ((0, 0), (0, 0), (0, pa)))
        # padded anchor centers far outside any gt -> never candidates
        anc_t = jnp.pad(anc_t, ((0, 0), (0, pa)), constant_values=-1e6)

    gt_labels_i = gt_labels.astype(jnp.int32)                         # (bs,ng,1)
    gt_bboxes_f = gt_bboxes.astype(jnp.float32)                       # (bs,ng,9)
    mask_gt_f = mask_gt.astype(jnp.float32)                           # (bs,ng,1)
    if ng_pad != n_gt:
        pg = ng_pad - n_gt
        gt_labels_i = jnp.pad(gt_labels_i, ((0, 0), (0, pg), (0, 0)))
        gt_bboxes_f = jnp.pad(gt_bboxes_f, ((0, 0), (0, pg), (0, 0)))
        mask_gt_f = jnp.pad(mask_gt_f, ((0, 0), (0, pg), (0, 0)))     # masked out

    kernel = functools.partial(_tal_kernel, topk=topk, nc=nc, n_gt=ng_pad,
                               na=na_pad, alpha=alpha, beta=beta, eps=eps,
                               lane_bits=lane_bits)

    out_shapes = (
        jax.ShapeDtypeStruct((bs, 1, na_pad), jnp.int32),    # target_labels
        jax.ShapeDtypeStruct((bs, 9, na_pad), jnp.float32),  # target_bboxes^T
        jax.ShapeDtypeStruct((bs, nc, na_pad), jnp.float32), # target_scores^T
        jax.ShapeDtypeStruct((bs, 1, na_pad), jnp.float32),  # fg_mask
        jax.ShapeDtypeStruct((bs, 1, na_pad), jnp.int32),    # target_gt_idx
    )
    in_specs = [
        pl.BlockSpec((1, nc, na_pad), lambda b: (b, 0, 0)),
        pl.BlockSpec((1, 9, na_pad), lambda b: (b, 0, 0)),
        pl.BlockSpec((2, na_pad), lambda b: (0, 0)),
        pl.BlockSpec((1, ng_pad, 1), lambda b: (b, 0, 0)),
        pl.BlockSpec((1, ng_pad, 9), lambda b: (b, 0, 0)),
        pl.BlockSpec((1, ng_pad, 1), lambda b: (b, 0, 0)),
    ]
    out_specs = (
        pl.BlockSpec((1, 1, na_pad), lambda b: (b, 0, 0)),
        pl.BlockSpec((1, 9, na_pad), lambda b: (b, 0, 0)),
        pl.BlockSpec((1, nc, na_pad), lambda b: (b, 0, 0)),
        pl.BlockSpec((1, 1, na_pad), lambda b: (b, 0, 0)),
        pl.BlockSpec((1, 1, na_pad), lambda b: (b, 0, 0)),
    )

    tl, tb, ts, fg, tgi = pl.pallas_call(
        kernel,
        out_shape=out_shapes,
        grid=(bs,),
        in_specs=in_specs,
        out_specs=out_specs,
        compiler_params=pltpu.CompilerParams(
            dimension_semantics=("parallel",),
            vmem_limit_bytes=64 * 1024 * 1024),
    )(ps_t, pb_t, anc_t, gt_labels_i, gt_bboxes_f, mask_gt_f)

    # --- back to the PyTorch layout; drop anchor padding ----------------------
    target_labels = tl[:, 0, :na]                                  # (bs, na) i32
    target_bboxes = jnp.transpose(tb, (0, 2, 1))[:, :na, :]        # (bs, na, 9)
    target_scores = jnp.transpose(ts, (0, 2, 1))[:, :na, :]        # (bs, na, nc)
    fg_mask = fg[:, 0, :na] > 0                                    # (bs, na) bool
    target_gt_idx = tgi[:, 0, :na]                                 # (bs, na) i32
    return target_labels, target_bboxes, target_scores, fg_mask, target_gt_idx


def _make_polys(key, centers, n, min_wh=8.0, max_wh=48.0):
    """Axis-aligned rectangles expressed as 4-corner polys + trailing 0."""
    kx, ky = jax.random.split(key)
    w = jax.random.uniform(kx, (n, 1), minval=min_wh, maxval=max_wh)
    h = jax.random.uniform(ky, (n, 1), minval=min_wh, maxval=max_wh)
    cx, cy = centers[:, 0:1], centers[:, 1:2]
    x1, x2 = cx - w / 2, cx + w / 2
    y1, y2 = cy - h / 2, cy + h / 2
    # corner order matching select_candidates_in_gts: lt, lb, rb, rt
    poly = jnp.concatenate([x1, y1, x1, y2, x2, y2, x2, y1,
                            jnp.zeros_like(x1)], axis=-1)          # (n, 9)
    return poly


if __name__ == "__main__":
    key = jax.random.PRNGKey(0)
    bs, H, W, nc, n_gt = 2, 16, 17, 80, 5     # na=272, n_gt=5 exercise padding
    na = H * W
    stride = 8.0

    ys = (jnp.arange(H, dtype=jnp.float32) + 0.5) * stride
    xs = (jnp.arange(W, dtype=jnp.float32) + 0.5) * stride
    gy, gx = jnp.meshgrid(ys, xs, indexing="ij")
    anc_points = jnp.stack([gx.reshape(-1), gy.reshape(-1)], axis=-1)  # (na, 2)

    k1, k2, k3, k4, k5 = jax.random.split(key, 5)
    pd_scores = jax.nn.sigmoid(jax.random.normal(k1, (bs, na, nc), jnp.float32))

    # predicted polys: one box around each anchor center
    pd_polys = []
    for b in range(bs):
        pd_polys.append(_make_polys(jax.random.fold_in(k2, b), anc_points, na))
    pd_bboxes = jnp.stack(pd_polys, axis=0)                            # (bs,na,9)

    # ground-truth polys: random centers inside the image
    gt_polys, gt_labels = [], []
    for b in range(bs):
        kc = jax.random.fold_in(k3, b)
        ctr = jax.random.uniform(kc, (n_gt, 2), minval=16.0,
                                 maxval=float(W * stride - 16.0))
        gt_polys.append(_make_polys(jax.random.fold_in(k4, b), ctr, n_gt,
                                    min_wh=24.0, max_wh=80.0))
        gt_labels.append(jax.random.randint(jax.random.fold_in(k5, b),
                                            (n_gt, 1), 0, nc))
    gt_bboxes = jnp.stack(gt_polys, axis=0)                            # (bs,ngt,9)
    gt_labels = jnp.stack(gt_labels, axis=0)                           # (bs,ngt,1)
    mask_gt = jnp.ones((bs, n_gt, 1), jnp.float32)
    mask_gt = mask_gt.at[1, -1, 0].set(0.0)   # one padded gt in batch 1

    outs = task_aligned_assigner(pd_scores, pd_bboxes, anc_points,
                                 gt_labels, gt_bboxes, mask_gt,
                                 topk=13, num_classes=nc,
                                 alpha=1.0, beta=6.0, eps=1e-9)
    jax.block_until_ready(outs)

    tl, tb, ts, fgm, tgi = outs
    assert tl.shape == (bs, na) and tl.dtype == jnp.int32
    assert tb.shape == (bs, na, 9)
    assert ts.shape == (bs, na, nc)
    assert fgm.shape == (bs, na) and fgm.dtype == jnp.bool_
    assert tgi.shape == (bs, na) and tgi.dtype == jnp.int32
    print("KERNEL_OK")
</pallas_src>

<mosaic_0001>
module attributes {stable_mosaic.version = 11 : i64} {
  func.func @_tal_kernel(%arg0: i32, %arg1: memref<1x80x384xbf16, #tpu.memory_space<vmem>>, %arg2: memref<1x9x384xf32, #tpu.memory_space<vmem>>, %arg3: memref<2x384xf32, #tpu.memory_space<vmem>>, %arg4: memref<1x8x1xi32, #tpu.memory_space<vmem>>, %arg5: memref<1x8x9xf32, #tpu.memory_space<vmem>>, %arg6: memref<1x8x1xf32, #tpu.memory_space<vmem>>, %arg7: memref<1x1x384xi32, #tpu.memory_space<vmem>>, %arg8: memref<1x9x384xf32, #tpu.memory_space<vmem>>, %arg9: memref<1x80x384xf32, #tpu.memory_space<vmem>>, %arg10: memref<1x1x384xf32, #tpu.memory_space<vmem>>, %arg11: memref<1x1x384xi32, #tpu.memory_space<vmem>>) attributes {dimension_semantics = [#tpu.dimension_semantics<parallel>], iteration_bounds = array<i64: 2>, scalar_prefetch = 0 : i64, scratch_operands = 0 : i64, tpu.core_type = #tpu.core_type<tc>, window_params = [{transform_indices = @transform_0, window_bounds = array<i64: 1, 80, 384>}, {transform_indices = @transform_1, window_bounds = array<i64: 1, 9, 384>}, {pipeline_mode = #tpu.pipeline_mode<synchronous>, transform_indices = @transform_2, window_bounds = array<i64: 2, 384>}, {transform_indices = @transform_3, window_bounds = array<i64: 1, 8, 1>}, {transform_indices = @transform_4, window_bounds = array<i64: 1, 8, 9>}, {transform_indices = @transform_5, window_bounds = array<i64: 1, 8, 1>}, {transform_indices = @transform_6, window_bounds = array<i64: 1, 1, 384>}, {transform_indices = @transform_7, window_bounds = array<i64: 1, 9, 384>}, {transform_indices = @transform_8, window_bounds = array<i64: 1, 80, 384>}, {transform_indices = @transform_9, window_bounds = array<i64: 1, 1, 384>}, {transform_indices = @transform_10, window_bounds = array<i64: 1, 1, 384>}]} {
    %c0 = arith.constant 0 : index
    %c0_0 = arith.constant 0 : index
    %c0_1 = arith.constant 0 : index
    %0 = vector.load %arg1[%c0, %c0_0, %c0_1] : memref<1x80x384xbf16, #tpu.memory_space<vmem>>, vector<1x80x384xbf16>
    %1 = vector.shape_cast %0 : vector<1x80x384xbf16> to vector<80x384xbf16>
    %c0_2 = arith.constant 0 : index
    %c0_3 = arith.constant 0 : index
    %c0_4 = arith.constant 0 : index
    %2 = vector.load %arg2[%c0_2, %c0_3, %c0_4] : memref<1x9x384xf32, #tpu.memory_space<vmem>>, vector<1x9x384xf32>
    %3 = vector.shape_cast %2 : vector<1x9x384xf32> to vector<9x384xf32>
    %c0_5 = arith.constant 0 : index
    %c0_6 = arith.constant 0 : index
    %4 = vector.load %arg3[%c0_5, %c0_6] : memref<2x384xf32, #tpu.memory_space<vmem>>, vector<2x384xf32>
    %c0_7 = arith.constant 0 : index
    %c0_8 = arith.constant 0 : index
    %c0_9 = arith.constant 0 : index
    %5 = vector.load %arg4[%c0_7, %c0_8, %c0_9] : memref<1x8x1xi32, #tpu.memory_space<vmem>>, vector<1x8x1xi32>
    %6 = vector.shape_cast %5 : vector<1x8x1xi32> to vector<8x1xi32>
    %c0_10 = arith.constant 0 : index
    %c0_11 = arith.constant 0 : index
    %c0_12 = arith.constant 0 : index
    %7 = vector.load %arg5[%c0_10, %c0_11, %c0_12] : memref<1x8x9xf32, #tpu.memory_space<vmem>>, vector<1x8x9xf32>
    %8 = vector.shape_cast %7 : vector<1x8x9xf32> to vector<8x9xf32>
    %c0_13 = arith.constant 0 : index
    %c0_14 = arith.constant 0 : index
    %c0_15 = arith.constant 0 : index
    %9 = vector.load %arg6[%c0_13, %c0_14, %c0_15] : memref<1x8x1xf32, #tpu.memory_space<vmem>>, vector<1x8x1xf32>
    %10 = vector.shape_cast %9 : vector<1x8x1xf32> to vector<8x1xf32>
    %11 = tpu.iota {dimensions = array<i32: 1>} : vector<8x80xi32>
    %12 = vector.broadcast %6 : vector<8x1xi32> to vector<8x80xi32>
    %13 = arith.cmpi eq, %11, %12 : vector<8x80xi32>
    %14 = arith.extui %13 : vector<8x80xi1> to vector<8x80xi32>
    %15 = arith.sitofp %14 : vector<8x80xi32> to vector<8x80xf32>
    %16 = arith.truncf %15 : vector<8x80xf32> to vector<8x80xbf16>
    %cst = arith.constant dense<0.000000e+00> : vector<8x384xf32>
    %17 = tpu.matmul %16, %1, %cst {dimension_numbers = #tpu.dot_dimension_numbers<[1], [0], [0], [1], [0, 0, 1, 1], [], []>} : vector<8x80xbf16>, vector<80x384xbf16>, vector<8x384xf32> -> vector<8x384xf32>
    %18 = vector.extract_strided_slice %3 {offsets = [0, 0], sizes = [1, 384], strides = [1, 1]} : vector<9x384xf32> to vector<1x384xf32>
    %19 = vector.extract_strided_slice %3 {offsets = [2, 0], sizes = [1, 384], strides = [1, 1]} : vector<9x384xf32> to vector<1x384xf32>
    %20 = vector.extract_strided_slice %3 {offsets = [4, 0], sizes = [1, 384], strides = [1, 1]} : vector<9x384xf32> to vector<1x384xf32>
    %21 = vector.extract_strided_slice %3 {offsets = [6, 0], sizes = [1, 384], strides = [1, 1]} : vector<9x384xf32> to vector<1x384xf32>
    %22 = vector.extract_strided_slice %3 {offsets = [1, 0], sizes = [1, 384], strides = [1, 1]} : vector<9x384xf32> to vector<1x384xf32>
    %23 = vector.extract_strided_slice %3 {offsets = [3, 0], sizes = [1, 384], strides = [1, 1]} : vector<9x384xf32> to vector<1x384xf32>
    %24 = vector.extract_strided_slice %3 {offsets = [5, 0], sizes = [1, 384], strides = [1, 1]} : vector<9x384xf32> to vector<1x384xf32>
    %25 = vector.extract_strided_slice %3 {offsets = [7, 0], sizes = [1, 384], strides = [1, 1]} : vector<9x384xf32> to vector<1x384xf32>
    %26 = arith.minimumf %18, %19 : vector<1x384xf32>
    %27 = arith.minimumf %20, %21 : vector<1x384xf32>
    %28 = arith.minimumf %26, %27 : vector<1x384xf32>
    %29 = arith.maximumf %18, %19 : vector<1x384xf32>
    %30 = arith.maximumf %20, %21 : vector<1x384xf32>
    %31 = arith.maximumf %29, %30 : vector<1x384xf32>
    %32 = arith.minimumf %22, %23 : vector<1x384xf32>
    %33 = arith.minimumf %24, %25 : vector<1x384xf32>
    %34 = arith.minimumf %32, %33 : vector<1x384xf32>
    %35 = arith.maximumf %22, %23 : vector<1x384xf32>
    %36 = arith.maximumf %24, %25 : vector<1x384xf32>
    %37 = arith.maximumf %35, %36 : vector<1x384xf32>
    %38 = vector.extract_strided_slice %8 {offsets = [0, 0], sizes = [8, 1], strides = [1, 1]} : vector<8x9xf32> to vector<8x1xf32>
    %39 = vector.extract_strided_slice %8 {offsets = [0, 2], sizes = [8, 1], strides = [1, 1]} : vector<8x9xf32> to vector<8x1xf32>
    %40 = vector.extract_strided_slice %8 {offsets = [0, 4], sizes = [8, 1], strides = [1, 1]} : vector<8x9xf32> to vector<8x1xf32>
    %41 = vector.extract_strided_slice %8 {offsets = [0, 6], sizes = [8, 1], strides = [1, 1]} : vector<8x9xf32> to vector<8x1xf32>
    %42 = vector.extract_strided_slice %8 {offsets = [0, 1], sizes = [8, 1], strides = [1, 1]} : vector<8x9xf32> to vector<8x1xf32>
    %43 = vector.extract_strided_slice %8 {offsets = [0, 3], sizes = [8, 1], strides = [1, 1]} : vector<8x9xf32> to vector<8x1xf32>
    %44 = vector.extract_strided_slice %8 {offsets = [0, 5], sizes = [8, 1], strides = [1, 1]} : vector<8x9xf32> to vector<8x1xf32>
    %45 = vector.extract_strided_slice %8 {offsets = [0, 7], sizes = [8, 1], strides = [1, 1]} : vector<8x9xf32> to vector<8x1xf32>
    %46 = arith.minimumf %38, %39 : vector<8x1xf32>
    %47 = arith.minimumf %40, %41 : vector<8x1xf32>
    %48 = arith.minimumf %46, %47 : vector<8x1xf32>
    %49 = arith.maximumf %38, %39 : vector<8x1xf32>
    %50 = arith.maximumf %40, %41 : vector<8x1xf32>
    %51 = arith.maximumf %49, %50 : vector<8x1xf32>
    %52 = arith.minimumf %42, %43 : vector<8x1xf32>
    %53 = arith.minimumf %44, %45 : vector<8x1xf32>
    %54 = arith.minimumf %52, %53 : vector<8x1xf32>
    %55 = arith.maximumf %42, %43 : vector<8x1xf32>
    %56 = arith.maximumf %44, %45 : vector<8x1xf32>
    %57 = arith.maximumf %55, %56 : vector<8x1xf32>
    %58 = vector.broadcast %51 : vector<8x1xf32> to vector<8x384xf32>
    %59 = vector.broadcast %31 : vector<1x384xf32> to vector<8x384xf32>
    %60 = arith.minimumf %58, %59 : vector<8x384xf32>
    %61 = vector.broadcast %48 : vector<8x1xf32> to vector<8x384xf32>
    %62 = vector.broadcast %28 : vector<1x384xf32> to vector<8x384xf32>
    %63 = arith.maximumf %61, %62 : vector<8x384xf32>
    %64 = arith.subf %60, %63 : vector<8x384xf32>
    %cst_16 = arith.constant 0.000000e+00 : f32
    %65 = vector.broadcast %cst_16 : f32 to vector<8x384xf32>
    %66 = arith.maximumf %64, %65 : vector<8x384xf32>
    %67 = vector.broadcast %57 : vector<8x1xf32> to vector<8x384xf32>
    %68 = vector.broadcast %37 : vector<1x384xf32> to vector<8x384xf32>
    %69 = arith.minimumf %67, %68 : vector<8x384xf32>
    %70 = vector.broadcast %54 : vector<8x1xf32> to vector<8x384xf32>
    %71 = vector.broadcast %34 : vector<1x384xf32> to vector<8x384xf32>
    %72 = arith.maximumf %70, %71 : vector<8x384xf32>
    %73 = arith.subf %69, %72 : vector<8x384xf32>
    %cst_17 = arith.constant 0.000000e+00 : f32
    %74 = vector.broadcast %cst_17 : f32 to vector<8x384xf32>
    %75 = arith.maximumf %73, %74 : vector<8x384xf32>
    %76 = arith.mulf %66, %75 : vector<8x384xf32>
    %77 = arith.subf %51, %48 : vector<8x1xf32>
    %78 = arith.subf %57, %54 : vector<8x1xf32>
    %79 = arith.mulf %77, %78 : vector<8x1xf32>
    %80 = arith.subf %31, %28 : vector<1x384xf32>
    %81 = arith.subf %37, %34 : vector<1x384xf32>
    %82 = arith.mulf %80, %81 : vector<1x384xf32>
    %cst_18 = arith.constant 9.99999971E-10 : f32
    %83 = vector.broadcast %cst_18 : f32 to vector<8x1xf32>
    %84 = arith.addf %79, %83 : vector<8x1xf32>
    %85 = vector.broadcast %84 : vector<8x1xf32> to vector<8x384xf32>
    %86 = vector.broadcast %82 : vector<1x384xf32> to vector<8x384xf32>
    %87 = arith.addf %85, %86 : vector<8x384xf32>
    %88 = arith.subf %87, %76 : vector<8x384xf32>
    %89 = arith.divf %76, %88 : vector<8x384xf32>
    %cst_19 = arith.constant 0.000000e+00 : f32
    %90 = vector.broadcast %cst_19 : f32 to vector<8x384xf32>
    %91 = arith.maximumf %89, %90 : vector<8x384xf32>
    %92 = arith.mulf %91, %91 : vector<8x384xf32>
    %93 = arith.mulf %92, %92 : vector<8x384xf32>
    %94 = arith.mulf %92, %93 : vector<8x384xf32>
    %95 = arith.mulf %17, %94 : vector<8x384xf32>
    %96 = vector.extract_strided_slice %4 {offsets = [0, 0], sizes = [1, 384], strides = [1, 1]} : vector<2x384xf32> to vector<1x384xf32>
    %97 = vector.extract_strided_slice %4 {offsets = [1, 0], sizes = [1, 384], strides = [1, 1]} : vector<2x384xf32> to vector<1x384xf32>
    %98 = vector.extract_strided_slice %8 {offsets = [0, 0], sizes = [8, 2], strides = [1, 1]} : vector<8x9xf32> to vector<8x2xf32>
    %99 = vector.extract_strided_slice %8 {offsets = [0, 2], sizes = [8, 2], strides = [1, 1]} : vector<8x9xf32> to vector<8x2xf32>
    %100 = vector.extract_strided_slice %8 {offsets = [0, 4], sizes = [8, 2], strides = [1, 1]} : vector<8x9xf32> to vector<8x2xf32>
    %101 = vector.extract_strided_slice %8 {offsets = [0, 6], sizes = [8, 2], strides = [1, 1]} : vector<8x9xf32> to vector<8x2xf32>
    %102 = arith.subf %101, %98 : vector<8x2xf32>
    %103 = arith.subf %99, %98 : vector<8x2xf32>
    %104 = vector.extract_strided_slice %102 {offsets = [0, 0], sizes = [8, 1], strides = [1, 1]} : vector<8x2xf32> to vector<8x1xf32>
    %105 = vector.broadcast %96 : vector<1x384xf32> to vector<8x384xf32>
    %106 = vector.broadcast %104 : vector<8x1xf32> to vector<8x384xf32>
    %107 = arith.mulf %105, %106 : vector<8x384xf32>
    %108 = vector.extract_strided_slice %102 {offsets = [0, 1], sizes = [8, 1], strides = [1, 1]} : vector<8x2xf32> to vector<8x1xf32>
    %109 = vector.broadcast %97 : vector<1x384xf32> to vector<8x384xf32>
    %110 = vector.broadcast %108 : vector<8x1xf32> to vector<8x384xf32>
    %111 = arith.mulf %109, %110 : vector<8x384xf32>
    %112 = arith.addf %107, %111 : vector<8x384xf32>
    %113 = vector.extract_strided_slice %103 {offsets = [0, 0], sizes = [8, 1], strides = [1, 1]} : vector<8x2xf32> to vector<8x1xf32>
    %114 = vector.broadcast %96 : vector<1x384xf32> to vector<8x384xf32>
    %115 = vector.broadcast %113 : vector<8x1xf32> to vector<8x384xf32>
    %116 = arith.mulf %114, %115 : vector<8x384xf32>
    %117 = vector.extract_strided_slice %103 {offsets = [0, 1], sizes = [8, 1], strides = [1, 1]} : vector<8x2xf32> to vector<8x1xf32>
    %118 = vector.broadcast %97 : vector<1x384xf32> to vector<8x384xf32>
    %119 = vector.broadcast %117 : vector<8x1xf32> to vector<8x384xf32>
    %120 = arith.mulf %118, %119 : vector<8x384xf32>
    %121 = arith.addf %116, %120 : vector<8x384xf32>
    %122 = arith.mulf %98, %102 : vector<8x2xf32>
    %cst_20 = arith.constant dense<0.000000e+00> : vector<8xf32>
    %123 = vector.multi_reduction <add>, %122, %cst_20 [1] : vector<8x2xf32> to vector<8xf32>
    %124 = vector.shape_cast %123 : vector<8xf32> to vector<8x1xf32>
    %125 = arith.mulf %99, %102 : vector<8x2xf32>
    %cst_21 = arith.constant dense<0.000000e+00> : vector<8xf32>
    %126 = vector.multi_reduction <add>, %125, %cst_21 [1] : vector<8x2xf32> to vector<8xf32>
    %127 = vector.shape_cast %126 : vector<8xf32> to vector<8x1xf32>
    %128 = arith.maximumf %124, %127 : vector<8x1xf32>
    %cst_22 = arith.constant 9.99999971E-10 : f32
    %129 = vector.broadcast %cst_22 : f32 to vector<8x1xf32>
    %130 = arith.addf %128, %129 : vector<8x1xf32>
    %131 = arith.mulf %100, %102 : vector<8x2xf32>
    %cst_23 = arith.constant dense<0.000000e+00> : vector<8xf32>
    %132 = vector.multi_reduction <add>, %131, %cst_23 [1] : vector<8x2xf32> to vector<8xf32>
    %133 = vector.shape_cast %132 : vector<8xf32> to vector<8x1xf32>
    %134 = arith.mulf %101, %102 : vector<8x2xf32>
    %cst_24 = arith.constant dense<0.000000e+00> : vector<8xf32>
    %135 = vector.multi_reduction <add>, %134, %cst_24 [1] : vector<8x2xf32> to vector<8xf32>
    %136 = vector.shape_cast %135 : vector<8xf32> to vector<8x1xf32>
    %137 = arith.minimumf %133, %136 : vector<8x1xf32>
    %cst_25 = arith.constant 9.99999971E-10 : f32
    %138 = vector.broadcast %cst_25 : f32 to vector<8x1xf32>
    %139 = arith.subf %137, %138 : vector<8x1xf32>
    %140 = arith.mulf %98, %103 : vector<8x2xf32>
    %cst_26 = arith.constant dense<0.000000e+00> : vector<8xf32>
    %141 = vector.multi_reduction <add>, %140, %cst_26 [1] : vector<8x2xf32> to vector<8xf32>
    %142 = vector.shape_cast %141 : vector<8xf32> to vector<8x1xf32>
    %143 = arith.mulf %101, %103 : vector<8x2xf32>
    %cst_27 = arith.constant dense<0.000000e+00> : vector<8xf32>
    %144 = vector.multi_reduction <add>, %143, %cst_27 [1] : vector<8x2xf32> to vector<8xf32>
    %145 = vector.shape_cast %144 : vector<8xf32> to vector<8x1xf32>
    %146 = arith.maximumf %142, %145 : vector<8x1xf32>
    %cst_28 = arith.constant 9.99999971E-10 : f32
    %147 = vector.broadcast %cst_28 : f32 to vector<8x1xf32>
    %148 = arith.addf %146, %147 : vector<8x1xf32>
    %149 = arith.mulf %99, %103 : vector<8x2xf32>
    %cst_29 = arith.constant dense<0.000000e+00> : vector<8xf32>
    %150 = vector.multi_reduction <add>, %149, %cst_29 [1] : vector<8x2xf32> to vector<8xf32>
    %151 = vector.shape_cast %150 : vector<8xf32> to vector<8x1xf32>
    %152 = arith.mulf %100, %103 : vector<8x2xf32>
    %cst_30 = arith.constant dense<0.000000e+00> : vector<8xf32>
    %153 = vector.multi_reduction <add>, %152, %cst_30 [1] : vector<8x2xf32> to vector<8xf32>
    %154 = vector.shape_cast %153 : vector<8xf32> to vector<8x1xf32>
    %155 = arith.minimumf %151, %154 : vector<8x1xf32>
    %cst_31 = arith.constant 9.99999971E-10 : f32
    %156 = vector.broadcast %cst_31 : f32 to vector<8x1xf32>
    %157 = arith.subf %155, %156 : vector<8x1xf32>
    %158 = vector.broadcast %130 : vector<8x1xf32> to vector<8x384xf32>
    %159 = arith.cmpf ogt, %112, %158 : vector<8x384xf32>
    %160 = vector.broadcast %139 : vector<8x1xf32> to vector<8x384xf32>
    %161 = arith.cmpf olt, %112, %160 : vector<8x384xf32>
    %162 = arith.andi %159, %161 : vector<8x384xi1>
    %163 = vector.broadcast %148 : vector<8x1xf32> to vector<8x384xf32>
    %164 = arith.cmpf ogt, %121, %163 : vector<8x384xf32>
    %165 = arith.andi %162, %164 : vector<8x384xi1>
    %166 = vector.broadcast %157 : vector<8x1xf32> to vector<8x384xf32>
    %167 = arith.cmpf olt, %121, %166 : vector<8x384xf32>
    %168 = arith.andi %165, %167 : vector<8x384xi1>
    %cst_32 = arith.constant 0.000000e+00 : f32
    %169 = vector.broadcast %cst_32 : f32 to vector<8x384xf32>
    %170 = arith.select %168, %95, %169 : vector<8x384xi1>, vector<8x384xf32>
    %171 = tpu.iota {dimensions = array<i32: 1>} : vector<8x384xi32>
    %c383_i32 = arith.constant 383 : i32
    %172 = vector.broadcast %c383_i32 : i32 to vector<8x384xi32>
    %173 = arith.subi %172, %171 : vector<8x384xi32>
    %174 = tpu.bitcast %170 : vector<8x384xf32> -> vector<8x384xi32>
    %c-512_i32 = arith.constant -512 : i32
    %175 = vector.broadcast %c-512_i32 : i32 to vector<8x384xi32>
    %176 = arith.andi %174, %175 : vector<8x384xi32>
    %177 = arith.ori %176, %173 : vector<8x384xi32>
    %false = arith.constant false
    %178 = vector.broadcast %false : i1 to vector<8x384xi1>
    %cst_33 = arith.constant dense<-2147483648> : vector<8xi32>
    %179 = vector.multi_reduction <maxsi>, %177, %cst_33 [1] : vector<8x384xi32> to vector<8xi32>
    %180 = vector.shape_cast %179 : vector<8xi32> to vector<8x1xi32>
    %181 = vector.broadcast %180 : vector<8x1xi32> to vector<8x384xi32>
    %182 = arith.cmpi eq, %177, %181 : vector<8x384xi32>
    %183 = arith.ori %178, %182 : vector<8x384xi1>
    %c-1_i32 = arith.constant -1 : i32
    %184 = vector.broadcast %c-1_i32 : i32 to vector<8x384xi32>
    %185 = arith.select %182, %184, %177 : vector<8x384xi1>, vector<8x384xi32>
    %cst_34 = arith.constant dense<-2147483648> : vector<8xi32>
    %186 = vector.multi_reduction <maxsi>, %185, %cst_34 [1] : vector<8x384xi32> to vector<8xi32>
    %187 = vector.shape_cast %186 : vector<8xi32> to vector<8x1xi32>
    %188 = vector.broadcast %187 : vector<8x1xi32> to vector<8x384xi32>
    %189 = arith.cmpi eq, %185, %188 : vector<8x384xi32>
    %190 = arith.ori %183, %189 : vector<8x384xi1>
    %c-1_i32_35 = arith.constant -1 : i32
    %191 = vector.broadcast %c-1_i32_35 : i32 to vector<8x384xi32>
    %192 = arith.select %189, %191, %185 : vector<8x384xi1>, vector<8x384xi32>
    %cst_36 = arith.constant dense<-2147483648> : vector<8xi32>
    %193 = vector.multi_reduction <maxsi>, %192, %cst_36 [1] : vector<8x384xi32> to vector<8xi32>
    %194 = vector.shape_cast %193 : vector<8xi32> to vector<8x1xi32>
    %195 = vector.broadcast %194 : vector<8x1xi32> to vector<8x384xi32>
    %196 = arith.cmpi eq, %192, %195 : vector<8x384xi32>
    %197 = arith.ori %190, %196 : vector<8x384xi1>
    %c-1_i32_37 = arith.constant -1 : i32
    %198 = vector.broadcast %c-1_i32_37 : i32 to vector<8x384xi32>
    %199 = arith.select %196, %198, %192 : vector<8x384xi1>, vector<8x384xi32>
    %cst_38 = arith.constant dense<-2147483648> : vector<8xi32>
    %200 = vector.multi_reduction <maxsi>, %199, %cst_38 [1] : vector<8x384xi32> to vector<8xi32>
    %201 = vector.shape_cast %200 : vector<8xi32> to vector<8x1xi32>
    %202 = vector.broadcast %201 : vector<8x1xi32> to vector<8x384xi32>
    %203 = arith.cmpi eq, %199, %202 : vector<8x384xi32>
    %204 = arith.ori %197, %203 : vector<8x384xi1>
    %c-1_i32_39 = arith.constant -1 : i32
    %205 = vector.broadcast %c-1_i32_39 : i32 to vector<8x384xi32>
    %206 = arith.select %203, %205, %199 : vector<8x384xi1>, vector<8x384xi32>
    %cst_40 = arith.constant dense<-2147483648> : vector<8xi32>
    %207 = vector.multi_reduction <maxsi>, %206, %cst_40 [1] : vector<8x384xi32> to vector<8xi32>
    %208 = vector.shape_cast %207 : vector<8xi32> to vector<8x1xi32>
    %209 = vector.broadcast %208 : vector<8x1xi32> to vector<8x384xi32>
    %210 = arith.cmpi eq, %206, %209 : vector<8x384xi32>
    %211 = arith.ori %204, %210 : vector<8x384xi1>
    %c-1_i32_41 = arith.constant -1 : i32
    %212 = vector.broadcast %c-1_i32_41 : i32 to vector<8x384xi32>
    %213 = arith.select %210, %212, %206 : vector<8x384xi1>, vector<8x384xi32>
    %cst_42 = arith.constant dense<-2147483648> : vector<8xi32>
    %214 = vector.multi_reduction <maxsi>, %213, %cst_42 [1] : vector<8x384xi32> to vector<8xi32>
    %215 = vector.shape_cast %214 : vector<8xi32> to vector<8x1xi32>
    %216 = vector.broadcast %215 : vector<8x1xi32> to vector<8x384xi32>
    %217 = arith.cmpi eq, %213, %216 : vector<8x384xi32>
    %218 = arith.ori %211, %217 : vector<8x384xi1>
    %c-1_i32_43 = arith.constant -1 : i32
    %219 = vector.broadcast %c-1_i32_43 : i32 to vector<8x384xi32>
    %220 = arith.select %217, %219, %213 : vector<8x384xi1>, vector<8x384xi32>
    %cst_44 = arith.constant dense<-2147483648> : vector<8xi32>
    %221 = vector.multi_reduction <maxsi>, %220, %cst_44 [1] : vector<8x384xi32> to vector<8xi32>
    %222 = vector.shape_cast %221 : vector<8xi32> to vector<8x1xi32>
    %223 = vector.broadcast %222 : vector<8x1xi32> to vector<8x384xi32>
    %224 = arith.cmpi eq, %220, %223 : vector<8x384xi32>
    %225 = arith.ori %218, %224 : vector<8x384xi1>
    %c-1_i32_45 = arith.constant -1 : i32
    %226 = vector.broadcast %c-1_i32_45 : i32 to vector<8x384xi32>
    %227 = arith.select %224, %226, %220 : vector<8x384xi1>, vector<8x384xi32>
    %cst_46 = arith.constant dense<-2147483648> : vector<8xi32>
    %228 = vector.multi_reduction <maxsi>, %227, %cst_46 [1] : vector<8x384xi32> to vector<8xi32>
    %229 = vector.shape_cast %228 : vector<8xi32> to vector<8x1xi32>
    %230 = vector.broadcast %229 : vector<8x1xi32> to vector<8x384xi32>
    %231 = arith.cmpi eq, %227, %230 : vector<8x384xi32>
    %232 = arith.ori %225, %231 : vector<8x384xi1>
    %c-1_i32_47 = arith.constant -1 : i32
    %233 = vector.broadcast %c-1_i32_47 : i32 to vector<8x384xi32>
    %234 = arith.select %231, %233, %227 : vector<8x384xi1>, vector<8x384xi32>
    %cst_48 = arith.constant dense<-2147483648> : vector<8xi32>
    %235 = vector.multi_reduction <maxsi>, %234, %cst_48 [1] : vector<8x384xi32> to vector<8xi32>
    %236 = vector.shape_cast %235 : vector<8xi32> to vector<8x1xi32>
    %237 = vector.broadcast %236 : vector<8x1xi32> to vector<8x384xi32>
    %238 = arith.cmpi eq, %234, %237 : vector<8x384xi32>
    %239 = arith.ori %232, %238 : vector<8x384xi1>
    %c-1_i32_49 = arith.constant -1 : i32
    %240 = vector.broadcast %c-1_i32_49 : i32 to vector<8x384xi32>
    %241 = arith.select %238, %240, %234 : vector<8x384xi1>, vector<8x384xi32>
    %cst_50 = arith.constant dense<-2147483648> : vector<8xi32>
    %242 = vector.multi_reduction <maxsi>, %241, %cst_50 [1] : vector<8x384xi32> to vector<8xi32>
    %243 = vector.shape_cast %242 : vector<8xi32> to vector<8x1xi32>
    %244 = vector.broadcast %243 : vector<8x1xi32> to vector<8x384xi32>
    %245 = arith.cmpi eq, %241, %244 : vector<8x384xi32>
    %246 = arith.ori %239, %245 : vector<8x384xi1>
    %c-1_i32_51 = arith.constant -1 : i32
    %247 = vector.broadcast %c-1_i32_51 : i32 to vector<8x384xi32>
    %248 = arith.select %245, %247, %241 : vector<8x384xi1>, vector<8x384xi32>
    %cst_52 = arith.constant dense<-2147483648> : vector<8xi32>
    %249 = vector.multi_reduction <maxsi>, %248, %cst_52 [1] : vector<8x384xi32> to vector<8xi32>
    %250 = vector.shape_cast %249 : vector<8xi32> to vector<8x1xi32>
    %251 = vector.broadcast %250 : vector<8x1xi32> to vector<8x384xi32>
    %252 = arith.cmpi eq, %248, %251 : vector<8x384xi32>
    %253 = arith.ori %246, %252 : vector<8x384xi1>
    %c-1_i32_53 = arith.constant -1 : i32
    %254 = vector.broadcast %c-1_i32_53 : i32 to vector<8x384xi32>
    %255 = arith.select %252, %254, %248 : vector<8x384xi1>, vector<8x384xi32>
    %cst_54 = arith.constant dense<-2147483648> : vector<8xi32>
    %256 = vector.multi_reduction <maxsi>, %255, %cst_54 [1] : vector<8x384xi32> to vector<8xi32>
    %257 = vector.shape_cast %256 : vector<8xi32> to vector<8x1xi32>
    %258 = vector.broadcast %257 : vector<8x1xi32> to vector<8x384xi32>
    %259 = arith.cmpi eq, %255, %258 : vector<8x384xi32>
    %260 = arith.ori %253, %259 : vector<8x384xi1>
    %c-1_i32_55 = arith.constant -1 : i32
    %261 = vector.broadcast %c-1_i32_55 : i32 to vector<8x384xi32>
    %262 = arith.select %259, %261, %255 : vector<8x384xi1>, vector<8x384xi32>
    %cst_56 = arith.constant dense<-2147483648> : vector<8xi32>
    %263 = vector.multi_reduction <maxsi>, %262, %cst_56 [1] : vector<8x384xi32> to vector<8xi32>
    %264 = vector.shape_cast %263 : vector<8xi32> to vector<8x1xi32>
    %265 = vector.broadcast %264 : vector<8x1xi32> to vector<8x384xi32>
    %266 = arith.cmpi eq, %262, %265 : vector<8x384xi32>
    %267 = arith.ori %260, %266 : vector<8x384xi1>
    %268 = arith.andi %267, %168 : vector<8x384xi1>
    %cst_57 = arith.constant 0.000000e+00 : f32
    %269 = vector.broadcast %cst_57 : f32 to vector<8x1xf32>
    %270 = arith.cmpf ogt, %10, %269 : vector<8x1xf32>
    %271 = vector.broadcast %270 : vector<8x1xi1> to vector<8x384xi1>
    %272 = arith.andi %268, %271 : vector<8x384xi1>
    %cst_58 = arith.constant 1.000000e+00 : f32
    %cst_59 = arith.constant 0.000000e+00 : f32
    %273 = vector.broadcast %cst_58 : f32 to vector<8x384xf32>
    %274 = vector.broadcast %cst_59 : f32 to vector<8x384xf32>
    %275 = arith.select %272, %273, %274 : vector<8x384xi1>, vector<8x384xf32>
    %276 = tpu.iota {dimensions = array<i32: 0>} : vector<8x384xi32>
    %cst_60 = arith.constant dense<0.000000e+00> : vector<384xf32>
    %277 = vector.multi_reduction <add>, %275, %cst_60 [0] : vector<8x384xf32> to vector<384xf32>
    %278 = vector.shape_cast %277 : vector<384xf32> to vector<1x384xf32>
    %cst_61 = arith.constant dense<0xFF800000> : vector<384xf32>
    %279 = vector.multi_reduction <maximumf>, %91, %cst_61 [0] : vector<8x384xf32> to vector<384xf32>
    %280 = vector.shape_cast %279 : vector<384xf32> to vector<1x384xf32>
    %281 = vector.broadcast %280 : vector<1x384xf32> to vector<8x384xf32>
    %282 = arith.cmpf oeq, %91, %281 : vector<8x384xf32>
    %c8_i32 = arith.constant 8 : i32
    %283 = vector.broadcast %c8_i32 : i32 to vector<8x384xi32>
    %284 = arith.select %282, %276, %283 : vector<8x384xi1>, vector<8x384xi32>
    %cst_62 = arith.constant dense<2147483647> : vector<384xi32>
    %285 = vector.multi_reduction <minsi>, %284, %cst_62 [0] : vector<8x384xi32> to vector<384xi32>
    %286 = vector.shape_cast %285 : vector<384xi32> to vector<1x384xi32>
    %287 = vector.broadcast %286 : vector<1x384xi32> to vector<8x384xi32>
    %288 = arith.cmpi eq, %276, %287 : vector<8x384xi32>
    %cst_63 = arith.constant 1.000000e+00 : f32
    %cst_64 = arith.constant 0.000000e+00 : f32
    %289 = vector.broadcast %cst_63 : f32 to vector<8x384xf32>
    %290 = vector.broadcast %cst_64 : f32 to vector<8x384xf32>
    %291 = arith.select %288, %289, %290 : vector<8x384xi1>, vector<8x384xf32>
    %cst_65 = arith.constant 1.000000e+00 : f32
    %292 = vector.broadcast %cst_65 : f32 to vector<1x384xf32>
    %293 = arith.cmpf ogt, %278, %292 : vector<1x384xf32>
    %294 = vector.shape_cast %293 : vector<1x384xi1> to vector<1x384xi1>
    %295 = vector.broadcast %294 : vector<1x384xi1> to vector<8x384xi1>
    %296 = arith.select %295, %291, %275 : vector<8x384xi1>, vector<8x384xf32>
    %cst_66 = arith.constant dense<0.000000e+00> : vector<384xf32>
    %297 = vector.multi_reduction <add>, %296, %cst_66 [0] : vector<8x384xf32> to vector<384xf32>
    %298 = vector.shape_cast %297 : vector<384xf32> to vector<1x384xf32>
    %cst_67 = arith.constant 0.000000e+00 : f32
    %299 = vector.broadcast %cst_67 : f32 to vector<8x384xf32>
    %300 = arith.cmpf ogt, %296, %299 : vector<8x384xf32>
    %c8_i32_68 = arith.constant 8 : i32
    %301 = vector.broadcast %c8_i32_68 : i32 to vector<8x384xi32>
    %302 = arith.select %300, %276, %301 : vector<8x384xi1>, vector<8x384xi32>
    %cst_69 = arith.constant dense<2147483647> : vector<384xi32>
    %303 = vector.multi_reduction <minsi>, %302, %cst_69 [0] : vector<8x384xi32> to vector<384xi32>
    %304 = vector.shape_cast %303 : vector<384xi32> to vector<1x384xi32>
    %cst_70 = arith.constant 0.000000e+00 : f32
    %305 = vector.broadcast %cst_70 : f32 to vector<1x384xf32>
    %306 = arith.cmpf ogt, %298, %305 : vector<1x384xf32>
    %c0_i32 = arith.constant 0 : i32
    %307 = vector.broadcast %c0_i32 : i32 to vector<1x384xi32>
    %308 = arith.select %306, %304, %307 : vector<1x384xi1>, vector<1x384xi32>
    %309 = vector.broadcast %308 : vector<1x384xi32> to vector<8x384xi32>
    %310 = arith.cmpi eq, %276, %309 : vector<8x384xi32>
    %cst_71 = arith.constant 1.000000e+00 : f32
    %cst_72 = arith.constant 0.000000e+00 : f32
    %311 = vector.broadcast %cst_71 : f32 to vector<8x384xf32>
    %312 = vector.broadcast %cst_72 : f32 to vector<8x384xf32>
    %313 = arith.select %310, %311, %312 : vector<8x384xi1>, vector<8x384xf32>
    %314 = arith.sitofp %6 : vector<8x1xi32> to vector<8x1xf32>
    %315 = vector.broadcast %314 : vector<8x1xf32> to vector<8x384xf32>
    %316 = arith.mulf %313, %315 : vector<8x384xf32>
    %cst_73 = arith.constant dense<0.000000e+00> : vector<384xf32>
    %317 = vector.multi_reduction <add>, %316, %cst_73 [0] : vector<8x384xf32> to vector<384xf32>
    %318 = vector.shape_cast %317 : vector<384xf32> to vector<1x384xf32>
    %cst_74 = arith.constant dense<0.000000e+00> : vector<9x384xf32>
    %319 = tpu.matmul %8, %313, %cst_74 {dimension_numbers = #tpu.dot_dimension_numbers<[0], [0], [1], [1], [0, 1, 1, 1], [], []>} : vector<8x9xf32>, vector<8x384xf32>, vector<9x384xf32> -> vector<9x384xf32>
    %320 = arith.mulf %95, %296 : vector<8x384xf32>
    %cst_75 = arith.constant dense<0xFF800000> : vector<8xf32>
    %321 = vector.multi_reduction <maximumf>, %320, %cst_75 [1] : vector<8x384xf32> to vector<8xf32>
    %322 = vector.shape_cast %321 : vector<8xf32> to vector<8x1xf32>
    %323 = arith.mulf %91, %296 : vector<8x384xf32>
    %cst_76 = arith.constant dense<0xFF800000> : vector<8xf32>
    %324 = vector.multi_reduction <maximumf>, %323, %cst_76 [1] : vector<8x384xf32> to vector<8xf32>
    %325 = vector.shape_cast %324 : vector<8xf32> to vector<8x1xf32>
    %cst_77 = arith.constant 9.99999971E-10 : f32
    %326 = vector.broadcast %cst_77 : f32 to vector<8x1xf32>
    %327 = arith.addf %322, %326 : vector<8x1xf32>
    %328 = arith.divf %325, %327 : vector<8x1xf32>
    %329 = vector.broadcast %328 : vector<8x1xf32> to vector<8x384xf32>
    %330 = arith.mulf %320, %329 : vector<8x384xf32>
    %cst_78 = arith.constant dense<0xFF800000> : vector<384xf32>
    %331 = vector.multi_reduction <maximumf>, %330, %cst_78 [0] : vector<8x384xf32> to vector<384xf32>
    %332 = vector.shape_cast %331 : vector<384xf32> to vector<1x384xf32>
    %cst_79 = arith.constant 0.000000e+00 : f32
    %333 = vector.broadcast %cst_79 : f32 to vector<1x384xf32>
    %334 = arith.cmpf ogt, %298, %333 : vector<1x384xf32>
    %cst_80 = arith.constant 0.000000e+00 : f32
    %335 = vector.broadcast %cst_80 : f32 to vector<1x384xf32>
    %336 = arith.select %334, %332, %335 : vector<1x384xi1>, vector<1x384xf32>
    %337 = vector.broadcast %336 : vector<1x384xf32> to vector<8x384xf32>
    %338 = arith.mulf %313, %337 : vector<8x384xf32>
    %339 = arith.truncf %338 : vector<8x384xf32> to vector<8x384xbf16>
    %cst_81 = arith.constant dense<0.000000e+00> : vector<80x384xf32>
    %340 = tpu.matmul %16, %339, %cst_81 {dimension_numbers = #tpu.dot_dimension_numbers<[0], [0], [1], [1], [0, 1, 1, 1], [], []>} : vector<8x80xbf16>, vector<8x384xbf16>, vector<80x384xf32> -> vector<80x384xf32>
    %341 = arith.fptosi %318 : vector<1x384xf32> to vector<1x384xi32>
    %c0_82 = arith.constant 0 : index
    %c0_83 = arith.constant 0 : index
    %c0_84 = arith.constant 0 : index
    %342 = vector.load %arg7[%c0_82, %c0_83, %c0_84] : memref<1x1x384xi32, #tpu.memory_space<vmem>>, vector<1x1x384xi32>
    %343 = vector.shape_cast %342 : vector<1x1x384xi32> to vector<1x384xi32>
    %344 = vector.shape_cast %341 : vector<1x384xi32> to vector<1x1x384xi32>
    tpu.vector_store %arg7[%c0_82, %c0_83, %c0_84], %344 {strides = array<i32>} : memref<1x1x384xi32, #tpu.memory_space<vmem>>, vector<1x1x384xi32>,
    %c0_85 = arith.constant 0 : index
    %c0_86 = arith.constant 0 : index
    %c0_87 = arith.constant 0 : index
    %345 = vector.load %arg8[%c0_85, %c0_86, %c0_87] : memref<1x9x384xf32, #tpu.memory_space<vmem>>, vector<1x9x384xf32>
    %346 = vector.shape_cast %345 : vector<1x9x384xf32> to vector<9x384xf32>
    %347 = vector.shape_cast %319 : vector<9x384xf32> to vector<1x9x384xf32>
    tpu.vector_store %arg8[%c0_85, %c0_86, %c0_87], %347 {strides = array<i32>} : memref<1x9x384xf32, #tpu.memory_space<vmem>>, vector<1x9x384xf32>,
    %c0_88 = arith.constant 0 : index
    %c0_89 = arith.constant 0 : index
    %c0_90 = arith.constant 0 : index
    %348 = vector.load %arg9[%c0_88, %c0_89, %c0_90] : memref<1x80x384xf32, #tpu.memory_space<vmem>>, vector<1x80x384xf32>
    %349 = vector.shape_cast %348 : vector<1x80x384xf32> to vector<80x384xf32>
    %350 = vector.shape_cast %340 : vector<80x384xf32> to vector<1x80x384xf32>
    tpu.vector_store %arg9[%c0_88, %c0_89, %c0_90], %350 {strides = array<i32>} : memref<1x80x384xf32, #tpu.memory_space<vmem>>, vector<1x80x384xf32>,
    %c0_91 = arith.constant 0 : index
    %c0_92 = arith.constant 0 : index
    %c0_93 = arith.constant 0 : index
    %351 = vector.load %arg10[%c0_91, %c0_92, %c0_93] : memref<1x1x384xf32, #tpu.memory_space<vmem>>, vector<1x1x384xf32>
    %352 = vector.shape_cast %351 : vector<1x1x384xf32> to vector<1x384xf32>
    %353 = vector.shape_cast %298 : vector<1x384xf32> to vector<1x1x384xf32>
    tpu.vector_store %arg10[%c0_91, %c0_92, %c0_93], %353 {strides = array<i32>} : memref<1x1x384xf32, #tpu.memory_space<vmem>>, vector<1x1x384xf32>,
    %c0_94 = arith.constant 0 : index
    %c0_95 = arith.constant 0 : index
    %c0_96 = arith.constant 0 : index
    %354 = vector.load %arg11[%c0_94, %c0_95, %c0_96] : memref<1x1x384xi32, #tpu.memory_space<vmem>>, vector<1x1x384xi32>
    %355 = vector.shape_cast %354 : vector<1x1x384xi32> to vector<1x384xi32>
    %356 = vector.shape_cast %308 : vector<1x384xi32> to vector<1x1x384xi32>
    tpu.vector_store %arg11[%c0_94, %c0_95, %c0_96], %356 {strides = array<i32>} : memref<1x1x384xi32, #tpu.memory_space<vmem>>, vector<1x1x384xi32>,
    return
  }
  func.func @transform_0(%arg0: i32) -> (i32, i32, i32) {
    %c0_i32 = arith.constant 0 : i32
    %c0_i32_0 = arith.constant 0 : i32
    %c0_i32_1 = arith.constant 0 : i32
    return %arg0, %c0_i32, %c0_i32_0 : i32, i32, i32
  }
  func.func @transform_1(%arg0: i32) -> (i32, i32, i32) {
    %c0_i32 = arith.constant 0 : i32
    %c0_i32_0 = arith.constant 0 : i32
    %c0_i32_1 = arith.constant 0 : i32
    return %arg0, %c0_i32, %c0_i32_0 : i32, i32, i32
  }
  func.func @transform_2(%arg0: i32) -> (i32, i32) {
    %c0_i32 = arith.constant 0 : i32
    %c0_i32_0 = arith.constant 0 : i32
    %c0_i32_1 = arith.constant 0 : i32
    return %c0_i32, %c0_i32_0 : i32, i32
  }
  func.func @transform_3(%arg0: i32) -> (i32, i32, i32) {
    %c0_i32 = arith.constant 0 : i32
    %c0_i32_0 = arith.constant 0 : i32
    %c0_i32_1 = arith.constant 0 : i32
    return %arg0, %c0_i32, %c0_i32_0 : i32, i32, i32
  }
  func.func @transform_4(%arg0: i32) -> (i32, i32, i32) {
    %c0_i32 = arith.constant 0 : i32
    %c0_i32_0 = arith.constant 0 : i32
    %c0_i32_1 = arith.constant 0 : i32
    return %arg0, %c0_i32, %c0_i32_0 : i32, i32, i32
  }
  func.func @transform_5(%arg0: i32) -> (i32, i32, i32) {
    %c0_i32 = arith.constant 0 : i32
    %c0_i32_0 = arith.constant 0 : i32
    %c0_i32_1 = arith.constant 0 : i32
    return %arg0, %c0_i32, %c0_i32_0 : i32, i32, i32
  }
  func.func @transform_6(%arg0: i32) -> (i32, i32, i32) {
    %c0_i32 = arith.constant 0 : i32
    %c0_i32_0 = arith.constant 0 : i32
    %c0_i32_1 = arith.constant 0 : i32
    return %arg0, %c0_i32, %c0_i32_0 : i32, i32, i32
  }
  func.func @transform_7(%arg0: i32) -> (i32, i32, i32) {
    %c0_i32 = arith.constant 0 : i32
    %c0_i32_0 = arith.constant 0 : i32
    %c0_i32_1 = arith.constant 0 : i32
    return %arg0, %c0_i32, %c0_i32_0 : i32, i32, i32
  }
  func.func @transform_8(%arg0: i32) -> (i32, i32, i32) {
    %c0_i32 = arith.constant 0 : i32
    %c0_i32_0 = arith.constant 0 : i32
    %c0_i32_1 = arith.constant 0 : i32
    return %arg0, %c0_i32, %c0_i32_0 : i32, i32, i32
  }
  func.func @transform_9(%arg0: i32) -> (i32, i32, i32) {
    %c0_i32 = arith.constant 0 : i32
    %c0_i32_0 = arith.constant 0 : i32
    %c0_i32_1 = arith.constant 0 : i32
    return %arg0, %c0_i32, %c0_i32_0 : i32, i32, i32
  }
  func.func @transform_10(%arg0: i32) -> (i32, i32, i32) {
    %c0_i32 = arith.constant 0 : i32
    %c0_i32_0 = arith.constant 0 : i32
    %c0_i32_1 = arith.constant 0 : i32
    return %arg0, %c0_i32, %c0_i32_0 : i32, i32, i32
  }
}

</mosaic_0001>

<bundles_post_ra>
// kernel: tpu_custom_call.1
= control target key start
LH: loop header
LB: loop body
LE: loop exit
PB: predicated region body
PF: predicated region fallthrough
CT: control target
= control target key end

     0   :  { %s4030_s0 = inlined_call_operand.hbm [shape: bf16[2,80,384], index: 0, kind: input, shape index: {}]   ;;  %s4031_s1 = inlined_call_operand.vmem [shape: f32[2,9,384], index: 1, kind: input, shape index: {}]   ;;  %s4032_s2 = inlined_call_operand.vmem [shape: f32[2,384], index: 2, kind: input, shape index: {}]   ;;  %s4033_s3 = inlined_call_operand.vmem [shape: s32[2,8,1], index: 3, kind: input, shape index: {}]   ;;  %s4034_s4 = inlined_call_operand.vmem [shape: f32[2,8,9], index: 4, kind: input, shape index: {}]   ;;  %s4035_s5 = inlined_call_operand.vmem [shape: f32[2,8,1], index: 5, kind: input, shape index: {}]   ;;  %s4036_s6 = inlined_call_operand.hbm [shape: s32[2,1,384], index: 6, kind: output, shape index: {0}]   ;;  %s4037_s7 = inlined_call_operand.vmem [shape: f32[2,9,384], index: 7, kind: output, shape index: {1}]   ;;  %s4038_s8 = inlined_call_operand.hbm [shape: f32[2,80,384], index: 8, kind: output, shape index: {2}]   ;;  %s4039_s9 = inlined_call_operand.hbm [shape: f32[2,1,384], index: 9, kind: output, shape index: {3}]   ;;  %s4040_s10 = inlined_call_operand.hbm [shape: s32[2,1,384], index: 10, kind: output, shape index: {4}]  }
   0x1   :  { %4053 = sst [smem:[#allocation18_spill]] %s4030_s0 }
   0x2   :  { %4054 = sst [smem:[#allocation19_spill]] %s4031_s1 }
   0x3   :  { %4055 = sst [smem:[#allocation20_spill]] %s4032_s2 }
   0x4   :  { %16 = vsyncpa [#allocation3], 0 }
   0x5   :  { %18 = vsyncpa [#allocation3 + $0x1], 0 }
   0x6   :  { %19 = vsyncpa [#allocation4], 0 }
   0x7   :  { %21 = vsyncpa [#allocation4 + $0x1], 0 }
   0x8   :  { %22 = vsyncpa [#allocation7], 0 }
   0x9   :  { %24 = vsyncpa [#allocation7 + $0x1], 0 }
   0xa   :  { %25 = vsyncpa [#allocation10], 0 }
   0xb   :  { %27 = vsyncpa [#allocation10 + $0x1], 0  ;;  %s3046_s13 = smov 0   ;;  %s3048_s14 = smov 0  }
   0xc   :  { %s3050_s15 = smov 0   ;;  %s3052_s16 = smov 0  }
   0xd LB: > { %4056 = sst [smem:[#allocation15_spill]] %s2959_s15  ;;  %s3067_s17 = sadd.s32 4294967295, %s2963_s16   ;;  %s2963_s16 = sphi %s3052_s16, %s4150_s16   ;;  %s2959_s15 = sphi %s3050_s15, %s4152_s15   ;;  %s2955_s14 = sphi %s3048_s14, %s4154_s14   ;;  %s2951_s13 = sphi %s3046_s13, %s4153_s13  }
   0xe   : > { %s4041_s18 = sadd.s32 4294967294, %s2963_s16   ;;  %s3071_s19 = sadd.s32 1, %s2963_s16  }
   0xf   : > { %4057 = sst [smem:[#allocation16_spill]] %s3071_s19  ;;  %s40_s20 = sadd.s32 1, %s2959_s15 }
  0x10   : > { %s37_s21 = ssub.s32 %s2963_s16, %s3071_s19  ;;  %p47_p0 = scmp.ne.s32.totalorder %s2959_s15, %s2955_s14 }
  0x11   : > { %p38_p1 = scmp.eq.s32.totalorder %s37_s21, 0  ;;  %p48_p2 = scmp.eq.s32.totalorder %s2963_s16, 0 }
  0x12   : > { %p53_p3 = scmp.ne.s32.totalorder %s2955_s14, %s2951_s13  ;;  %p54_p4 = scmp.eq.s32.totalorder %s3067_s17, 0 }
  0x13   : > { %s3083_s22 = scalar_select %p38_p1, %s2959_s15, %s40_s20  }
  0x14   : > { %p49_p5 = por %p48_p2, %p47_p0  ;;  %p3085_p6 = por %p54_p4, %p53_p3 }
  0x15   : > { %4058 = sst [smem:[#allocation17_spill]] %s3083_s22  ;;  %p202_p7 = scmp.eq.s32.totalorder %s3067_s17, 1 }
  0x16   : > { %s4059_s23 = scalar_select %p3085_p6, 1, 0 }
  0x17   : > { %p208_p8 = scmp.eq.s32.totalorder %s4041_s18, 1  ;;  %p2689_p10 = scmp.lt.s32.totalorder %s2963_s16, 2 }
  0x18   : > { %p3094_p11 = por %p202_p7, %p47_p0  ;;  %s335_s26 = sand.u32 1, %s2959_s15  }
  0x19   : > { %p3098_p12 = por %p208_p8, %p53_p3  ;;  %s2647_s27 = smul.u32 1920, %s2963_s16 }
  0x1a   : > { %s4060_s24 = scalar_select %p3094_p11, 1, 0 }
  0x1b   : > { %s4061_s25 = scalar_select %p3098_p12, 1, 0 }
  0x1c   : > { %s2646_s28 = smul.u32 120, %s335_s26  ;;  %s4062_s0 = sld [smem:[#allocation18_spill]] }
  0x1d   : > { %p3109_p13 = pnand %p2689_p10, %p49_p5  ;;  %s3115_s18 = scalar_lea.sflag [#allocation3], %s335_s26 }
  0x1e   : > { %s339_s20 = scalar_lea.vmem [#allocation2], %s2646_s28 }
  0x1f   : > { %s346_s21 = sshll.u32 %s339_s20, 4  ;;  %p2787_p1 = pneg %p3109_p13  ;;  %s3113_s21 = int_to_ptr.vmem [resolvable:$true] %s346_s21 }
  0x22   : > { %s3107_s11 = scalar_lea.hbm %s4062_s0, %s2647_s27  ;;  %s2790_s30 = scalar_lea.hbm %s4062_s0, 3840 }
  0x23   : > { %s2785_s22 = scalar_lea.hbm %s3107_s11, 1920  ;;  %p2791_p4 = scmp.lt.s32.totalorder %s3107_s11, %s4062_s0 }
  0x24   : > { %p2786_p0 = scmp.ne.s32.totalorder %s3107_s11, %s2785_s22  ;;  %p2792_p5 = scmp.lt.s32.totalorder %s2790_s30, %s2785_s22 }
  0x26   : > { %p2788_p2 = pnand %p2787_p1, %p2786_p0  ;;  %p2793_p7 = por %p2792_p5, %p2791_p4 }
  0x28   : > { %p2789_p3 = pneg %p2788_p2 }
  0x2a   : > { %p2794_p8 = pnand %p2793_p7, %p2789_p3 }
  0x2c   : > { %2797 = shalt.err (!%p2794_p8)
}
  0x2d   : > { %s2798_s26 = scalar_lea.vmem %s3113_s21, 1920  ;;  %s2965_s28 = smov [#allocation2]  }
  0x2e   : > { %p2799_p10 = scmp.ne.s32.totalorder %s3113_s21, %s2798_s26  ;;  %s2803_s20 = sshll.u32 %s2965_s28, 4  ;;  %s2804_s20 = int_to_ptr.vmem [resolvable:$false] %s2803_s20 }
  0x2f   : > { %s2805_s27 = scalar_lea.vmem %s2804_s20, 3840  ;;  %p2806_p2 = scmp.lt.s32.totalorder %s3113_s21, %s2804_s20 }
  0x30   : > { %p2801_p9 = pnand %p2799_p10, %p2787_p1  ;;  %p2807_p12 = scmp.lt.s32.totalorder %s2805_s27, %s2798_s26 }
  0x32   : > { %p2802_p0 = pneg %p2801_p9  ;;  %p2808_p11 = por %p2807_p12, %p2806_p2 }
  0x34   : > { %p2809_p6 = pnand %p2808_p11, %p2802_p0 }
  0x36   : > { %2812 = shalt.err (!%p2809_p6)
}
  0x37   : > { %s2966_s15 = smov 192   ;;  %s2967_s19 = smov 12  }
  0x38   : > { %2675 = dma.hbm_to_vmem [thread:$0]  (!%p3109_p13), %s3107_s11, 1920, %s3113_s21, %s3115_s18, %s2966_s15, %s2966_s15, %s2967_s19  }
  0x39   : > { %p2540_p9 = scmp.ge.s32.totalorder %s2963_s16, 1  ;;  %p383_p1 = scmp.lt.s32.totalorder %s2963_s16, 3 }
  0x3b   : > { %p384_p3 = pnand %p2540_p9, %p383_p1 }
  0x3c   : > { %s3139_s22 = sand.u32 (!%p384_p3), 1, %s2955_s14   ;;  %p4064_p6 = scmp.ne.s32.totalorder (!%p384_p3), %s4059_s23, 0 }
  0x3d   : > { %387 = sbr.rel (%p384_p3) target bundleno = 5001 (0x1389), region = 44  ;;  %s390_s30 = scalar_lea.sflag (!%p384_p3), [#allocation3], %s3139_s22 }
  0x3e   : > { %s2648_s29 = smul.u32 (!%p384_p3), 120, %s3139_s22 }
  0x40   : > { %s3143_s26 = scalar_lea.vmem (!%p384_p3), [#allocation2], %s2648_s29 }
  0x42   : > { %2934 = dma.done.wait (%p4064_p6), %s390_s30, 1920  }
  0x43   : > { %2936 = vsyncadd (%p4064_p6), %s390_s30, 4294965376  ;;  %p467_p11 = scmp.lt.s32.totalorder %s3067_s17, 1  ;;  %v2968_v0 = vmov 0   ;;  %s2969_s15 = smov 126   ;;  %v2755_v3 = vld [vmem:[%s3143_s26 + $0x64] ss:$12 sps:$4 sm:$0xff]   ;;  %v517_v25 = vlaneseq }
  0x44   : > { %2744 = vset.pattern.permute.xlu0 %v2968_v0  ;;  %642 = vmatprep.mubr.bf16.mxu0 %v2968_v0  ;;  %s2970_s19 = smov 6   ;;  %s2971_s29 = smov 2   ;;  %v2757_v4 = vld [vmem:[%s3143_s26 + $0x60] ss:$12 sps:$4 sm:$0xff]   ;;  %v2972_v5 = vmov 0.0   ;;  %vm4047_vm0 = vmmov 0  }
  0x45   : > { %s3153_s18 = scalar_select %p467_p11, %s3067_s17, 1  ;;  %2745 = vset.pattern.permute.xlu1 %v2968_v0  ;;  %2605 = vmatprep.subr.bf16.mxu1 %v2972_v5  ;;  %v2758_v6 = vld [vmem:[%s3143_s26 + $0x68] ss:$12 sps:$4 sm:$0xff]   ;;  %v2759_v7 = vld [vmem:[%s3143_s26 + $0x4c] ss:$12 sps:$4 sm:$0xff]   ;;  %v3217_v27 = vand.u32 127, %v517_v25 }
  0x46   : > { %2615 = vmatprep.mubr.msk.bf16.mxu1 %vm4047_vm0, %v2972_v5  ;;  %616 = vmatprep.subr.bf16.mxu0 %v2755_v3  ;;  %v2761_v8 = vld [vmem:[%s3143_s26 + $0x48] ss:$12 sps:$4 sm:$0xff]   ;;  %v2762_v9 = vld [vmem:[%s3143_s26 + $0x50] ss:$12 sps:$4 sm:$0xff]   ;;  %v2766_v12 = vld [vmem:[%s3143_s26 + $0x38] ss:$12 sps:$4 sm:$0xff]  }
  0x47   : > { %s3157_s11 = sshll.u32 %s3153_s18, 3  ;;  %617 = vmatpush1.bf16.msra.mxu0 %v2757_v4  ;;  %2606 = vmatpush3.bf16.msra.mxu1 %v2758_v6  ;;  %v2763_v10 = vld [vmem:[%s3143_s26 + $0x34] ss:$12 sps:$4 sm:$0xff]   ;;  %v2765_v11 = vld [vmem:[%s3143_s26 + $0x30] ss:$12 sps:$4 sm:$0xff]   ;;  %s2974_s30 = smov 124  }
  0x48   : > { %s3163_s21 = scalar_lea.vmem %s4034_s4, %s3157_s11  ;;  %s3169_s27 = scalar_lea.vmem %s4033_s3, %s3157_s11  ;;  %618 = vmatprep.subr.bf16.mxu0 %v2759_v7  ;;  %2607 = vmatprep.subr.bf16.mxu1 %v2972_v5  ;;  %v2767_v13 = vld [vmem:[%s3143_s26 + $0x1c] ss:$12 sps:$4 sm:$0xff]   ;;  %v2769_v14 = vld [vmem:[%s3143_s26 + $0x18] ss:$12 sps:$4 sm:$0xff]   ;;  %v2770_v15 = vld [vmem:[%s3143_s26 + $0x20] ss:$12 sps:$4 sm:$0xff]  }
  0x49   : > { %v3172_v1 = vld [vmem:[%s3163_s21] sm:$0xff]  ;;  %s2976_s23 = smov 122   ;;  %vm606_vm2 = vcmask 654336   ;;  %v2977_v44 = vmov 1   ;;  %v2978_v46 = vmov 7   ;;  %vm1008_vm3 = vcmask 15360  }
  0x4a   : > { %v514_v2 = vld [vmem:[%s3169_s27] sm:$0xff]  ;;  %731 = vrot.lane.b32.xlu0 %v3172_v1, %s2969_s15  ;;  %905 = vrot.lane.b32.xlu1 %v3172_v1, %s2970_s19  ;;  %s2979_s12 = smov 127   ;;  %s4051_s28 = smul.u32 48, %s3153_s18 }
  0x4b   : > { %619 = vmatpush1.bf16.msra.mxu0 %v2761_v8  ;;  %2608 = vmatpush3.bf16.msra.mxu1 %v2762_v9  ;;  %v2771_v16 = vld [vmem:[%s3143_s26 + $0x4] ss:$12 sps:$4 sm:$0xff]   ;;  %v2773_v17 = vld [vmem:[%s3143_s26] ss:$12 sps:$4 sm:$0xff]   ;;  %v2774_v18 = vld [vmem:[%s3143_s26 + $0x8] ss:$12 sps:$4 sm:$0xff]  }
  0x4c   : > { %620 = vmatprep.subr.bf16.mxu0 %v2763_v10  ;;  %2609 = vmatprep.subr.bf16.mxu1 %v2972_v5  ;;  %s2975_s26 = smov 4   ;;  %s4065_s1 = sld [smem:[#allocation19_spill]] }
  0x4d   : > { %s4066_s2 = sld [smem:[#allocation20_spill]]  ;;  %p4143_p13 = scmp.ne.s32.totalorder %s4060_s24, 0 }
  0x4e   : > { %909 = vrot.lane.b32.xlu1 %v3172_v1, %s2971_s29  ;;  %520 = vperm.xlu0 %2744, %v514_v2  }
  0x4f   : > { %621 = vmatpush1.bf16.msra.mxu0 %v2765_v11  ;;  %2610 = vmatpush3.bf16.msra.mxu1 %v2766_v12 }
  0x50   : > { %622 = vmatprep.subr.bf16.mxu0 %v2767_v13  ;;  %2611 = vmatprep.subr.bf16.mxu1 %v2972_v5 }
  0x52   : > { %s471_s19 = scalar_lea.vmem %s4065_s1, %s4051_s28 }
  0x53   : > { %623 = vmatpush1.bf16.msra.mxu0 %v2769_v14  ;;  %2612 = vmatpush3.bf16.msra.mxu1 %v2770_v15  ;;  %v510_v7 = vld [vmem:[%s471_s19] sm:$0xff]  ;;  %v511_v8 = vld [vmem:[%s471_s19 + $0x8] sm:$0xff]  ;;  %v512_v9 = vld [vmem:[%s471_s19 + $0x10] sm:$0xff] }
  0x54   : > { %624 = vmatprep.subr.bf16.mxu0 %v2771_v16  ;;  %2613 = vmatprep.subr.bf16.mxu1 %v2972_v5  ;;  %v694_v11 = vrot.slane %v510_v7, 2  ;;  %v695_v12 = vrot.slane %v511_v8, 2  ;;  %v696_v14 = vrot.slane %v512_v9, 2 }
  0x56   : > { %v700_v15 = vmin.f32 %v510_v7, %v694_v11  ;;  %v701_v16 = vmin.f32 %v511_v8, %v695_v12 }
  0x57   : > { %625 = vmatpush1.bf16.msra.mxu0 %v2773_v17  ;;  %2614 = vmatpush3.bf16.msra.mxu1 %v2774_v18  ;;  %v702_v17 = vmin.f32 %v512_v9, %v696_v14 }
  0xbc   : > { %v732_v19 = vpop.permute.xlu0 %731  ;;  %v906_v20 = vpop.permute.xlu1 %905 }
  0xbd   : > { %v734_v21 = vmin.f32 %v3172_v1, %v732_v19  ;;  %v740_v22 = vmax.f32 %v3172_v1, %v732_v19  ;;  %v3207_v23 = vsub.f32 %v3172_v1, %v906_v20  ;;  %v715_v19 = vmax.f32 %v510_v7, %v694_v11 }
  0xbe   : > { %v716_v20 = vmax.f32 %v511_v8, %v695_v12 }
  0xbf   : > { %736 = vrot.lane.b32.xlu1 %v734_v21, %s2974_s30  ;;  %742 = vrot.lane.b32.xlu0 %v740_v22, %s2974_s30  ;;  %v1036_v31 = vmul.f32 %v3207_v23, %v3172_v1 }
  0xc0   : > { %v910_v24 = vpop.permute.xlu1 %909 }
  0xc1   : > { %v3214_v26 = vsub.f32 %v3172_v1, %v910_v24  ;;  %v706_v24 = vrot.slane %v700_v15, 4 }
  0xc3   : > { %1012 = vrot.lane.b32.xlu1 %v3207_v23, %s2974_s30  ;;  %1025 = vrot.lane.b32.xlu0 %v3207_v23, %s2969_s15  ;;  %v1066_v32 = vmul.f32 %v3214_v26, %v3172_v1 }
  0xc7   : > { %1053 = vrot.lane.b32.xlu1 %v3214_v26, %s2975_s26  ;;  %1074 = vrot.lane.b32.xlu0 %v3214_v26, %s2971_s29 }
  0xc9   : > { %v521_v28 = vpop.permute.xlu0 %520 }
  0xca   : > { %vm522_vm1 = vcmp.eq.s32.totalorder %v3217_v27, %v521_v28  ;;  %v707_v28 = vrot.slane %v701_v16, 4 }
  0xcb   : > { %1046 = vrot.lane.b32.xlu1 %v3214_v26, %s2969_s15  ;;  %1004 = vrot.lane.b32.xlu0 %v3207_v23, %s2976_s23  ;;  %v2546_v29 = vsel %vm522_vm1, 1.0, %v2972_v5 }
  0xcc   : > { %v3227_v30 = vpack.c.bf16 %v2546_v29, %v2546_v29  ;;  %v708_v29 = vrot.slane %v702_v17, 4 }
  0xce   : > { %2562 = vmatmul.mubr.msk.bf16.vlgmr.msra.gmra.mxu0 %vm606_vm2, %v3227_v30  ;;  %2616 = vmatmul.mubr.msk.bf16.vlgmr.msra.gmra.mxu1 %vm606_vm2, %v3227_v30 }
  0xcf   : > { %1038 = vrot.lane.b32.xlu0 %v1036_v31, %s2976_s23  ;;  %1767 = vmatprep.mubr.f32.mxu0 %v2972_v5  ;;  %v3272_v31 = vshrl.u32 %v517_v25, 7 }
  0xd3   : > { %1068 = vrot.lane.b32.xlu0 %v1066_v32, %s2969_s15  ;;  %v721_v32 = vrot.slane %v715_v19, 4 }
 0x131   : > { %v737_v33 = vpop.permute.xlu1 %736  ;;  %v743_v34 = vpop.permute.xlu0 %742 }
 0x132   : > { %v745_v40 = vmax.f32 %v740_v22, %v743_v34  ;;  %v739_v45 = vmin.f32 %v734_v21, %v737_v33  ;;  %v717_v22 = vmax.f32 %v512_v9, %v696_v14  ;;  %v722_v33 = vrot.slane %v716_v20, 4 }
 0x134   : > { %v3250_v55 = vsub.f32 %v745_v40, %v739_v45  ;;  %v723_v34 = vrot.slane %v717_v22, 4 }
 0x135   : > { %v1013_v35 = vpop.permute.xlu1 %1012  ;;  %v1026_v36 = vpop.permute.xlu0 %1025 }
 0x136   : > { %v1015_v37 = vmul.f32 %v1013_v35, %v3172_v1  ;;  %v1028_v38 = vmul.f32 %v1026_v36, %v3172_v1  ;;  %v3274_v35 = vmin.f32 %v700_v15, %v706_v24  ;;  %v3276_v36 = vmin.f32 %v701_v16, %v707_v28 }
 0x138   : > { %1017 = vrot.lane.b32.xlu0 %v1015_v37, %s2969_s15  ;;  %1030 = vrot.lane.b32.xlu1 %v1028_v38, %s2974_s30  ;;  %v3278_v37 = vmin.f32 %v702_v17, %v708_v29  ;;  %v3281_v38 = vsub.s32 0, %v3272_v31 }
 0x139   : > { %v1054_v39 = vpop.permute.xlu1 %1053  ;;  %v1075_v42 = vpop.permute.xlu0 %1074 }
 0x13a   : > { %v1056_v41 = vmul.f32 %v1054_v39, %v3172_v1  ;;  %v1077_v43 = vmul.f32 %v1075_v42, %v3172_v1  ;;  %v3287_v42 = vmax.f32 %v717_v22, %v723_v34 }
 0x13c   : > { %748 = vperm.xlu0 %2744, %v745_v40   ;;  %1058 = vrot.lane.b32.xlu1 %v1056_v41, %s2976_s23  ;;  %v3285_v41 = vmax.f32 %v716_v20, %v722_v33  ;;  %s2219_s23 = scalar_lea.sflag [#allocation4], %s3139_s22 }
 0x13d   : > { %v1005_v47 = vpop.permute.xlu0 %1004  ;;  %v1047_v52 = vpop.permute.xlu1 %1046 }
 0x13e   : > { %v1007_v48 = vmul.f32 %v1005_v47, %v3172_v1  ;;  %v1049_v53 = vmul.f32 %v1047_v52, %v3172_v1 }
 0x140   : > { %2746 = vset.pattern.permute.xlu0 %v2977_v44  ;;  %1079 = vrot.lane.b32.xlu1 %v1077_v43, %s2974_s30  ;;  %v1009_v49 = vsel %vm1008_vm3, %v1007_v48, 0.0  ;;  %v1050_v54 = vsel %vm1008_vm3, %v1049_v53, 0.0  ;;  %v3290_v43 = vsub.s32 1, %v3272_v31  ;;  %v758_v48 = vrot.slane %v3285_v41, %v3281_v38 }
 0x141   : > { %793 = vperm.xlu0 %2746, %v745_v40   ;;  %v1039_v50 = vpop.permute.xlu0 %1038  ;;  %v3283_v40 = vmax.f32 %v715_v19, %v721_v32 }
 0x142   : > { %v1041_v51 = vsel %vm1008_vm3, %v1039_v50, 0.0  ;;  %v803_v53 = vrot.slane %v3285_v41, %v3290_v43 }
 0x143   : > { %v754_v47 = vrot.slane %v3283_v40, %v3281_v38  ;;  %v799_v50 = vrot.slane %v3283_v40, %v3290_v43 }
 0x144   : > { %768 = vperm.xlu1 %2745, %v739_v45  }
 0x145   : > { %2750 = vset.pattern.permute.xlu0 %v2978_v46  ;;  %v3260_v1 = vpop.permute.xlu0 %1068  ;;  %v782_v46 = vrot.slane %v3278_v37, %v3281_v38 }
 0x148   : > { %2747 = vset.pattern.permute.xlu1 %v2977_v44  ;;  %v774_v44 = vrot.slane %v3274_v35, %v3281_v38 }
 0x149   : > { %812 = vperm.xlu1 %2747, %v739_v45   ;;  %v778_v45 = vrot.slane %v3276_v36, %v3281_v38 }
 0x14d   : > { %2748 = vset.pattern.permute.xlu1 %v2968_v0 }
 0x160   : > { %1010 = vadd.xlane.f32.xlu0 %v1009_v49  ;;  %v762_v49 = vrot.slane %v3287_v42, %v3281_v38 }
 0x164   : > { %1042 = vadd.xlane.f32.xlu0 %v1041_v51 }
 0x16d   : > { %1051 = vadd.xlane.f32.xlu1 %v1050_v54  ;;  %v807_v54 = vrot.slane %v3287_v42, %v3290_v43 }
 0x17e   : > { %841 = vrot.lane.b32.xlu1 %v3250_v55, %s2979_s12  ;;  %s483_s12 = scalar_lea.vmem %s4035_s5, %s3157_s11  ;;  %s3760_s11 = smul.u32 3, %s3139_s22 }
 0x180   : > { %s4052_s20 = scalar_lea.vmem [#allocation9], %s3760_s11  ;;  %s438_s15 = scalar_lea.vmem [#allocation5], %s3760_s11 }
 0x181   : > { %s2253_s19 = sshll.u32 %s438_s15, 4  ;;  %s2254_s19 = int_to_ptr.vmem [resolvable:$true] %s2253_s19 }
 0x18e   : > { %v3253_v56 = vpop.f32.mrf.mxu0  ;;  %v3255_v57 = vpop.f32.mrf.mxu1 }
 0x190   : > { %v3257_v58 = vpop.f32.mrf.mxu0  ;;  %v2617_v59 = vpop.f32.mrf.mxu1 }
 0x192   : > { %v648_v60 = vpop.f32.mrf.mxu0  ;;  %v688_v61 = vpop.f32.mrf.mxu1 }
 0x194   : > { %v649_v62 = vpop.f32.mrf.mxu0  ;;  %v2618_v63 = vpop.f32.mrf.mxu1 }
 0x195   : > { %v818_v62 = vrot.slane %v3274_v35, %v3290_v43  ;;  %v822_v63 = vrot.slane %v3276_v36, %v3290_v43 }
 0x1aa   : > { %v1031_v2 = vpop.permute.xlu1 %1030  ;;  %v1018_v3 = vpop.permute.xlu0 %1017 }
 0x1ab   : > { %v1033_v4 = vsel %vm1008_vm3, %v1031_v2, 0.0  ;;  %v1020_v6 = vsel %vm1008_vm3, %v1018_v3, 0.0  ;;  %v826_v2 = vrot.slane %v3278_v37, %v3290_v43 }
 0x1ac   : > { %1034 = vadd.xlane.f32.xlu0 %v1033_v4  ;;  %1021 = vadd.xlane.f32.xlu1 %v1020_v6 }
 0x1ae   : > { %v1059_v10 = vpop.permute.xlu1 %1058 }
 0x1af   : > { %v1061_v13 = vsel %vm1008_vm3, %v1059_v10, 0.0 }
 0x1b0   : > { %1062 = vadd.xlane.f32.xlu0 %v1061_v13 }
 0x1b2   : > { %v1080_v18 = vpop.permute.xlu1 %1079 }
 0x1b3   : > { %v1082_v21 = vsel %vm1008_vm3, %v1080_v18, 0.0 }
 0x1b4   : > { %1083 = vadd.xlane.f32.xlu0 %v1082_v21 }
 0x1b7   : > { %v749_v39 = vpop.permute.xlu0 %748 }
 0x1b8   : > { %v763_v3 = vmin.f32 %v749_v39, %v754_v47  ;;  %v764_v4 = vmin.f32 %v749_v39, %v758_v48  ;;  %v765_v6 = vmin.f32 %v749_v39, %v762_v49  ;;  %v2980_v47 = vmov 6  }
 0x1b9   : > { %v1071_v48 = vsel %vm1008_vm3, %v3260_v1, 0.0  ;;  %v2981_v49 = vmov 2   ;;  %v847_v1 = vsub.f32 %v3287_v42, %v3278_v37 }
 0x1bc   : > { %v794_v52 = vpop.permute.xlu0 %793 }
 0x1bd   : > { %v808_v7 = vmin.f32 %v794_v52, %v799_v50  ;;  %v809_v8 = vmin.f32 %v794_v52, %v803_v53  ;;  %v810_v9 = vmin.f32 %v794_v52, %v807_v54  ;;  %v2982_v50 = vmov 3  }
 0x1be   : > { %v853_v53 = vrot.slane %v847_v1, 1 }
 0x1bf   : > { %v769_v51 = vpop.permute.xlu1 %768 }
 0x1c0   : > { %v783_v59 = vmax.f32 %v769_v51, %v774_v44  ;;  %v784_v60 = vmax.f32 %v769_v51, %v778_v45  ;;  %v785_v61 = vmax.f32 %v769_v51, %v782_v46  ;;  %v846_v51 = vsub.f32 %v3285_v41, %v3276_v36 }
 0x1c2   : > { %v786_v10 = vsub.f32 %v763_v3, %v783_v59  ;;  %v787_v11 = vsub.f32 %v764_v4, %v784_v60  ;;  %v788_v13 = vsub.f32 %v765_v6, %v785_v61  ;;  %v852_v52 = vrot.slane %v846_v51, 1 }
 0x1c3   : > { %v859_v61 = vmul.f32 %v853_v53, %v847_v1 }
 0x1c4   : > { %v813_v12 = vpop.permute.xlu1 %812  ;;  %v789_v20 = vmax.f32 %v786_v10, 0.0  ;;  %v790_v21 = vmax.f32 %v787_v11, 0.0  ;;  %v791_v22 = vmax.f32 %v788_v13, 0.0  ;;  %v858_v60 = vmul.f32 %v852_v52, %v846_v51  ;;  %v513_v10 = vld [vmem:[%s4066_s2] sm:$0x3f] }
 0x1c5   : > { %v827_v14 = vmax.f32 %v813_v12, %v818_v62  ;;  %v828_v15 = vmax.f32 %v813_v12, %v822_v63  ;;  %v829_v16 = vmax.f32 %v813_v12, %v826_v2  ;;  %v924_v11 = vsub.s32 4, %v3272_v31 }
 0x1c6   : > { %v873_v63 = vrot.slane %v858_v60, %v3281_v38 }
 0x1c7   : > { %v830_v17 = vsub.f32 %v808_v7, %v827_v14  ;;  %v831_v18 = vsub.f32 %v809_v8, %v828_v15  ;;  %v832_v19 = vsub.f32 %v810_v9, %v829_v16  ;;  %v920_v8 = vsub.s32 2, %v3272_v31 }
 0x1c8   : > { %v955_v9 = vsub.s32 3, %v3272_v31  ;;  %v959_v14 = vsub.s32 5, %v3272_v31  ;;  %v917_v15 = vrot.slane %v513_v10, %v3281_v38 }
 0x1c9   : > { %v833_v24 = vmax.f32 %v830_v17, 0.0  ;;  %v834_v28 = vmax.f32 %v831_v18, 0.0  ;;  %v835_v29 = vmax.f32 %v832_v19, 0.0  ;;  %v921_v16 = vrot.slane %v513_v10, %v920_v8 }
 0x1ca   : > { %977 = vperm.xlu0 %2750, %v3207_v23   ;;  %v952_v17 = vrot.slane %v513_v10, %v3290_v43  ;;  %v956_v18 = vrot.slane %v513_v10, %v955_v9 }
 0x1cb   : > { %v836_v32 = vmul.f32 %v833_v24, %v789_v20  ;;  %v837_v33 = vmul.f32 %v834_v28, %v790_v21  ;;  %v3317_v34 = vmul.f32 %v835_v29, %v791_v22  ;;  %v925_v21 = vrot.slane %v513_v10, %v924_v11 }
 0x1cc   : > { %v960_v29 = vrot.slane %v513_v10, %v959_v14 }
 0x1ce   : > { %v975_v51 = vrot.slane %v960_v29, %v3290_v43 }
 0x1e9   : > { %v1011_v41 = vpop.xlane.xlu0 %1010 }
 0x1ed   : > { %v1043_v3 = vpop.xlane.xlu0 %1042 }
 0x1f6   : > { %v3319_v39 = vpop.xlane.xlu1 %1051 }
 0x1fa   : > { %v842_v44 = vpop.permute.xlu1 %841 }
 0x1fb   : > { %v844_v45 = vmul.f32 %v842_v44, %v3250_v55  ;;  %v845_v55 = vsub.f32 %v3283_v40, %v3274_v35  ;;  %v877_v35 = vrot.slane %v859_v61, %v3281_v38  ;;  %v932_v44 = vrot.slane %v917_v15, %v3281_v38 }
 0x1fd   : > { %v860_v46 = vadd.f32 1e-09, %v844_v45  ;;  %v936_v45 = vrot.slane %v921_v16, %v3281_v38 }
 0x1ff   : > { %863 = vperm.xlu1 %2748, %v860_v46   ;;  %v967_v46 = vrot.slane %v952_v17, %v3290_v43 }
 0x203   : > { %2749 = vset.pattern.permute.xlu1 %v2980_v47  ;;  %v971_v47 = vrot.slane %v956_v18, %v3290_v43 }
 0x223   : > { %1072 = vadd.xlane.f32.xlu1 %v1071_v48 }
 0x234   : > { %943 = vperm.xlu1 %2749, %v3207_v23   ;;  %v851_v23 = vrot.slane %v845_v55, 1 }
 0x235   : > { %v3334_v59 = vpop.xlane.xlu1 %1021  ;;  %v1035_v6 = vpop.xlane.xlu0 %1034 }
 0x236   : > { %v857_v54 = vmul.f32 %v851_v23, %v845_v55  ;;  %v1023_v52 = vmax.f32 %v1011_v41, %v3334_v59  ;;  %v1044_v53 = vmin.f32 %v1035_v6, %v1043_v3 }
 0x238   : > { %2751 = vset.pattern.permute.xlu1 %v2981_v49 }
 0x239   : > { %988 = vperm.xlu1 %2751, %v3214_v26   ;;  %v3340_v7 = vpop.xlane.xlu0 %1062 }
 0x23a   : > { %v1064_v59 = vmax.f32 %v3319_v39, %v3340_v7 }
 0x23c   : > { %v1065_v7 = vadd.f32 1e-09, %v1064_v59 }
 0x23d   : > { %2752 = vset.pattern.permute.xlu1 %v2982_v50  ;;  %v1084_v19 = vpop.xlane.xlu0 %1083 }
 0x23e   : > { %995 = vperm.xlu1 %2752, %v3214_v26   ;;  %v869_v26 = vrot.slane %v857_v54, %v3281_v38 }
 0x242   : > { %2753 = vset.pattern.permute.xlu1 %v2968_v0 }
 0x245   : > { %v978_v48 = vpop.permute.xlu0 %977 }
 0x246   : > { %v980_v54 = vmul.f32 %v978_v48, %v967_v46  ;;  %v981_v60 = vmul.f32 %v978_v48, %v971_v47  ;;  %v982_v43 = vmul.f32 %v978_v48, %v975_v51 }
 0x27a   : > { %v864_v62 = vpop.permute.xlu1 %863 }
 0x27b   : > { %v878_v40 = vadd.f32 %v869_v26, %v864_v62  ;;  %v879_v36 = vadd.f32 %v873_v63, %v864_v62  ;;  %v880_v2 = vadd.f32 %v877_v35, %v864_v62 }
 0x27d   : > { %v881_v37 = vsub.f32 %v878_v40, %v836_v32  ;;  %v882_v42 = vsub.f32 %v879_v36, %v837_v33  ;;  %v883_v4 = vsub.f32 %v880_v2, %v3317_v34  ;;  %v1024_v40 = vadd.f32 1e-09, %v1023_v52 }
 0x27e   : > { %v2564_v36 = vadd.f32 -1e-09, %v1044_v53 }
 0x27f   : > { %2775 = vrcp.f32 %v881_v37 }
 0x280   : > { %2777 = vrcp.f32 %v882_v42 }
 0x281   : > { %2779 = vrcp.f32 %v883_v4 }
 0x28c   : > { %v2776_v12 = vpop.eup %2775 }
 0x28d   : > { %v2778_v13 = vpop.eup %2777  ;;  %v885_v20 = vmul.f32 %v2776_v12, %v836_v32  ;;  %v940_v32 = vrot.slane %v925_v21, %v3281_v38 }
 0x28e   : > { %v2780_v22 = vpop.eup %2779  ;;  %v887_v24 = vmul.f32 %v2778_v13, %v837_v33 }
 0x28f   : > { %v889_v49 = vmul.f32 %v2780_v22, %v3317_v34  ;;  %v3356_v50 = vmax.f32 %v885_v20, 0.0  ;;  %v1112_v22 = vadd.s32 256, %v3217_v27 }
 0x290   : > { %v3359_v55 = vmax.f32 %v887_v24, 0.0  ;;  %v1113_v24 = vsub.s32 383, %v3217_v27 }
 0x291   : > { %v3363_v61 = vmax.f32 %v889_v49, 0.0  ;;  %v893_v34 = vmul.f32 %v3356_v50, %v3356_v50  ;;  %v1115_v49 = vsub.s32 383, %v1112_v22 }
 0x292   : > { %v894_v35 = vmul.f32 %v3359_v55, %v3359_v55 }
 0x293   : > { %v895_v2 = vmul.f32 %v3363_v61, %v3363_v61  ;;  %v896_v37 = vmul.f32 %v893_v34, %v893_v34 }
 0x294   : > { %v897_v3 = vmul.f32 %v894_v35, %v894_v35 }
 0x295   : > { %v898_v39 = vmul.f32 %v895_v2, %v895_v2  ;;  %v899_v17 = vmul.f32 %v896_v37, %v893_v34 }
 0x296   : > { %v900_v18 = vmul.f32 %v897_v3, %v894_v35 }
 0x297   : > { %v901_v20 = vmul.f32 %v898_v39, %v895_v2  ;;  %v3378_v21 = vmul.f32 %v899_v17, %v3253_v56 }
 0x2ac   : > { %v1073_v28 = vpop.xlane.xlu1 %1072 }
 0x2ad   : > { %v1085_v42 = vmin.f32 %v1073_v28, %v1084_v19  ;;  %v1111_v19 = vadd.s32 128, %v3217_v27  ;;  %v3383_v28 = vmul.f32 %v900_v18, %v3257_v58  ;;  %v4071_v27 = vmov 0 }
 0x2af   : > { %v2565_v16 = vadd.f32 -1e-09, %v1085_v42 }
 0x2b0   : > { %v944_v33 = vpop.permute.xlu1 %943 }
 0x2b1   : > { %v946_v1 = vmul.f32 %v944_v33, %v932_v44  ;;  %v947_v23 = vmul.f32 %v944_v33, %v936_v45  ;;  %v948_v26 = vmul.f32 %v944_v33, %v940_v32 }
 0x2b3   : > { %v983_v62 = vadd.f32 %v980_v54, %v946_v1  ;;  %v984_v38 = vadd.f32 %v981_v60, %v947_v23  ;;  %v985_v41 = vadd.f32 %v982_v43, %v948_v26 }
 0x2b4   : > { %v989_v63 = vpop.permute.xlu1 %988 }
 0x2b5   : > { %vm1087_vm4 = vcmp.gt.f32.partialorder %v983_v62, %v1024_v40  ;;  %vm1088_vm5 = vcmp.gt.f32.partialorder %v984_v38, %v1024_v40  ;;  %vm1090_vm6 = vcmp.lt.f32.partialorder %v983_v62, %v2564_v36  ;;  %vm1091_vm7 = vcmp.lt.f32.partialorder %v984_v38, %v2564_v36 }
 0x2b6   : > { %v991_v4 = vmul.f32 %v989_v63, %v932_v44  ;;  %v992_v6 = vmul.f32 %v989_v63, %v936_v45  ;;  %v993_v9 = vmul.f32 %v989_v63, %v940_v32  ;;  %vm1089_vm8 = vcmp.gt.f32.partialorder %v985_v41, %v1024_v40  ;;  %vm1093_vm10 = vmand %vm1087_vm4, %vm1090_vm6 }
 0x2b7   : > { %vm1092_vm9 = vcmp.lt.f32.partialorder %v985_v41, %v2564_v36  ;;  %vm1094_vm11 = vmand %vm1088_vm5, %vm1091_vm7  ;;  %v1114_v44 = vsub.s32 383, %v1111_v19  ;;  %v3390_v45 = vmul.f32 %v901_v20, %v3255_v57 }
 0x2b8   : > { %vm1095_vm12 = vmand %vm1089_vm8, %vm1092_vm9 }
 0x2b9   : > { %v996_v8 = vpop.permute.xlu1 %995 }
 0x2ba   : > { %v998_v10 = vmul.f32 %v996_v8, %v967_v46  ;;  %v999_v11 = vmul.f32 %v996_v8, %v971_v47  ;;  %v1000_v12 = vmul.f32 %v996_v8, %v975_v51 }
 0x2bc   : > { %v1001_v13 = vadd.f32 %v998_v10, %v991_v4  ;;  %v1002_v14 = vadd.f32 %v999_v11, %v992_v6  ;;  %v1003_v15 = vadd.f32 %v1000_v12, %v993_v9 }
 0x2be   : > { %vm1096_vm13 = vcmp.gt.f32.partialorder %v1001_v13, %v1065_v7  ;;  %vm1097_vm14 = vcmp.gt.f32.partialorder %v1002_v14, %v1065_v7  ;;  %vm1098_vm15 = vcmp.gt.f32.partialorder %v1003_v15, %v1065_v7  ;;  %vm1102_vm2 = vcmp.lt.f32.partialorder %v1001_v13, %v2565_v16 }
 0x2bf   : > { %vm1099_vm1 = vmand %vm1093_vm10, %vm1096_vm13  ;;  %vm1103_vm4 = vcmp.lt.f32.partialorder %v1002_v14, %v2565_v16  ;;  %vm1104_vm0 = vcmp.lt.f32.partialorder %v1003_v15, %v2565_v16 }
 0x2c0   : > { %vm1100_vm3 = vmand %vm1094_vm11, %vm1097_vm14 }
 0x2c1   : > { %vm1101_vm6 = vmand %vm1095_vm12, %vm1098_vm15 }
 0x2c2   : > { %vm3385_vm5 = vmand %vm1099_vm1, %vm1102_vm2 }
 0x2c3   : > { %vm3392_vm7 = vmand %vm1100_vm3, %vm1103_vm4  ;;  %v1108_v46 = vsel %vm3385_vm5, %v3378_v21, 0.0 }
 0x2c4   : > { %vm3399_vm8 = vmand %vm1101_vm6, %vm1104_vm0  ;;  %v1109_v58 = vsel %vm3392_vm7, %v3383_v28, 0.0  ;;  %v1119_v47 = vand.u32 4294966784, %v1108_v46 }
 0x2c5   : > { %v4072_v27 = vsel %vm3399_vm8, 4294967295, %v4071_v27  ;;  %v1110_v57 = vsel %vm3399_vm8, %v3390_v45, 0.0  ;;  %v1120_v48 = vand.u32 4294966784, %v1109_v58 }
 0x2c6   : > { %v1121_v32 = vand.u32 4294966784, %v1110_v57  ;;  %v3409_v33 = vor.u32 %v1119_v47, %v1113_v24 }
 0x2c7   : > { %v3411_v51 = vor.u32 %v1120_v48, %v1114_v44 }
 0x2c8   : > { %v3413_v1 = vor.u32 %v1121_v32, %v1115_v49 }
 0x2c9   : > { %vm1125_vm0 = vcmp.gt.s32.totalorder %v3409_v33, %v3411_v51 }
 0x2ca   : > { %v1126_v23 = vsel %vm1125_vm0, %v3409_v33, %v3411_v51 }
 0x2cb   : > { %vm1127_vm9 = vcmp.gt.s32.totalorder %v1126_v23, %v3413_v1 }
 0x2cc   : > { %v1128_v52 = vsel %vm1127_vm9, %v1126_v23, %v3413_v1 }
 0x2cd   : > { %v1130_v53 = vshra.s32 %v1128_v52, 16  ;;  %v1129_v60 = vand.u32 65535, %v1128_v52 }
 0x2cf   : > { %v1132_v54 = vcvt.s32.f32 %v1130_v53  ;;  %v1131_v34 = vcvt.s32.f32 %v1129_v60 }
 0x2d1   : > { %1133 = vmax.xlane.f32.xlu1 %v1132_v54 }
 0x35a   : > { %v1134_v26 = vpop.xlane.xlu1 %1133 }
 0x35b   : > { %vm1135_vm10 = vcmp.eq.f32.partialorder %v1132_v54, %v1134_v26  ;;  %v1140_v38 = vcvt.f32.s32 %v1134_v26 }
 0x35c   : > { %v1136_v62 = vsel %vm1135_vm10, %v1131_v34, -inf }
 0x35d   : > { %1137 = vmax.xlane.f32.xlu0 %v1136_v62  ;;  %v1141_v35 = vshll.u32 %v1140_v38, 16 }
 0x3e6   : > { %v1138_v63 = vpop.xlane.xlu0 %1137 }
 0x3e7   : > { %v1139_v43 = vcvt.f32.s32 %v1138_v63 }
 0x3e9   : > { %v1142_v40 = vadd.s32 %v1141_v35, %v1139_v43 }
 0x3eb   : > { %vm1143_vm11 = vcmp.eq.s32.totalorder %v3409_v33, %v1142_v40  ;;  %vm1144_vm12 = vcmp.eq.s32.totalorder %v3411_v51, %v1142_v40  ;;  %vm1145_vm13 = vcmp.eq.s32.totalorder %v3413_v1, %v1142_v40 }
 0x3ec   : > { %v1146_v36 = vsel %vm1143_vm11, 4294967295, %v3409_v33  ;;  %v1147_v59 = vsel %vm1144_vm12, 4294967295, %v3411_v51  ;;  %v1148_v41 = vsel %vm1145_vm13, 4294967295, %v3413_v1 }
 0x3ed   : > { %vm1149_vm14 = vcmp.gt.s32.totalorder %v1146_v36, %v1147_v59 }
 0x3ee   : > { %v1150_v2 = vsel %vm1149_vm14, %v1146_v36, %v1147_v59 }
 0x3ef   : > { %vm1151_vm15 = vcmp.gt.s32.totalorder %v1150_v2, %v1148_v41 }
 0x3f0   : > { %v1152_v37 = vsel %vm1151_vm15, %v1150_v2, %v1148_v41 }
 0x3f1   : > { %v1154_v42 = vshra.s32 %v1152_v37, 16  ;;  %v1153_v4 = vand.u32 65535, %v1152_v37 }
 0x3f3   : > { %v1156_v3 = vcvt.s32.f32 %v1154_v42  ;;  %v1155_v8 = vcvt.s32.f32 %v1153_v4 }
 0x3f5   : > { %1157 = vmax.xlane.f32.xlu1 %v1156_v3 }
 0x47e   : > { %v1158_v6 = vpop.xlane.xlu1 %1157 }
 0x47f   : > { %vm1159_vm1 = vcmp.eq.f32.partialorder %v1156_v3, %v1158_v6  ;;  %v1164_v10 = vcvt.f32.s32 %v1158_v6 }
 0x480   : > { %v1160_v9 = vsel %vm1159_vm1, %v1155_v8, -inf }
 0x481   : > { %1161 = vmax.xlane.f32.xlu1 %v1160_v9  ;;  %v1165_v12 = vshll.u32 %v1164_v10, 16 }
 0x50a   : > { %v1162_v11 = vpop.xlane.xlu1 %1161 }
 0x50b   : > { %v1163_v39 = vcvt.f32.s32 %v1162_v11 }
 0x50d   : > { %v1166_v7 = vadd.s32 %v1165_v12, %v1163_v39 }
 0x50f   : > { %vm1167_vm2 = vcmp.eq.s32.totalorder %v1146_v36, %v1166_v7  ;;  %vm1168_vm3 = vcmp.eq.s32.totalorder %v1147_v59, %v1166_v7  ;;  %vm1169_vm4 = vcmp.eq.s32.totalorder %v1148_v41, %v1166_v7 }
 0x510   : > { %v1173_v13 = vsel %vm1167_vm2, 4294967295, %v1146_v36  ;;  %v1174_v14 = vsel %vm1168_vm3, 4294967295, %v1147_v59  ;;  %v1175_v15 = vsel %vm1169_vm4, 4294967295, %v1148_v41  ;;  %vm1170_vm10 = vmor %vm1143_vm11, %vm1167_vm2 }
 0x511   : > { %vm1176_vm6 = vcmp.gt.s32.totalorder %v1173_v13, %v1174_v14  ;;  %vm1171_vm14 = vmor %vm1144_vm12, %vm1168_vm3 }
 0x512   : > { %v1177_v16 = vsel %vm1176_vm6, %v1173_v13, %v1174_v14  ;;  %vm1172_vm15 = vmor %vm1145_vm13, %vm1169_vm4 }
 0x513   : > { %vm1178_vm0 = vcmp.gt.s32.totalorder %v1177_v16, %v1175_v15 }
 0x514   : > { %v1179_v17 = vsel %vm1178_vm0, %v1177_v16, %v1175_v15 }
 0x515   : > { %v1181_v18 = vshra.s32 %v1179_v17, 16  ;;  %v1180_v20 = vand.u32 65535, %v1179_v17 }
 0x517   : > { %v1183_v19 = vcvt.s32.f32 %v1181_v18  ;;  %v1182_v24 = vcvt.s32.f32 %v1180_v20 }
 0x519   : > { %1184 = vmax.xlane.f32.xlu1 %v1183_v19 }
 0x5a2   : > { %v1185_v22 = vpop.xlane.xlu1 %1184 }
 0x5a3   : > { %vm1186_vm9 = vcmp.eq.f32.partialorder %v1183_v19, %v1185_v22  ;;  %v1191_v46 = vcvt.f32.s32 %v1185_v22 }
 0x5a4   : > { %v1187_v44 = vsel %vm1186_vm9, %v1182_v24, -inf }
 0x5a5   : > { %1188 = vmax.xlane.f32.xlu1 %v1187_v44  ;;  %v1192_v47 = vshll.u32 %v1191_v46, 16 }
 0x62e   : > { %v1189_v58 = vpop.xlane.xlu1 %1188 }
 0x62f   : > { %v1190_v57 = vcvt.f32.s32 %v1189_v58 }
 0x631   : > { %v1193_v48 = vadd.s32 %v1192_v47, %v1190_v57 }
 0x633   : > { %vm1194_vm1 = vcmp.eq.s32.totalorder %v1173_v13, %v1193_v48  ;;  %vm1195_vm6 = vcmp.eq.s32.totalorder %v1174_v14, %v1193_v48  ;;  %vm1196_vm0 = vcmp.eq.s32.totalorder %v1175_v15, %v1193_v48 }
 0x634   : > { %vm3445_vm9 = vmor %vm1170_vm10, %vm1194_vm1  ;;  %v1200_v32 = vsel %vm1194_vm1, 4294967295, %v1173_v13  ;;  %v1201_v23 = vsel %vm1195_vm6, 4294967295, %v1174_v14  ;;  %v1202_v1 = vsel %vm1196_vm0, 4294967295, %v1175_v15 }
 0x635   : > { %vm3449_vm8 = vmor %vm1171_vm14, %vm1195_vm6  ;;  %vm1203_vm11 = vcmp.gt.s32.totalorder %v1200_v32, %v1201_v23 }
 0x636   : > { %vm3453_vm2 = vmor %vm1172_vm15, %vm1196_vm0  ;;  %v1204_v52 = vsel %vm1203_vm11, %v1200_v32, %v1201_v23 }
 0x637   : > { %vm1205_vm12 = vcmp.gt.s32.totalorder %v1204_v52, %v1202_v1 }
 0x638   : > { %v1206_v53 = vsel %vm1205_vm12, %v1204_v52, %v1202_v1 }
 0x639   : > { %v1208_v54 = vshra.s32 %v1206_v53, 16  ;;  %v1207_v26 = vand.u32 65535, %v1206_v53 }
 0x63b   : > { %v1210_v60 = vcvt.s32.f32 %v1208_v54  ;;  %v1209_v62 = vcvt.s32.f32 %v1207_v26 }
 0x63d   : > { %1211 = vmax.xlane.f32.xlu1 %v1210_v60 }
 0x6c6   : > { %v1212_v34 = vpop.xlane.xlu1 %1211 }
 0x6c7   : > { %vm1213_vm13 = vcmp.eq.f32.partialorder %v1210_v60, %v1212_v34  ;;  %v1218_v63 = vcvt.f32.s32 %v1212_v34 }
 0x6c8   : > { %v1214_v38 = vsel %vm1213_vm13, %v1209_v62, -inf }
 0x6c9   : > { %1215 = vmax.xlane.f32.xlu0 %v1214_v38  ;;  %v1219_v43 = vshll.u32 %v1218_v63, 16 }
 0x752   : > { %v1216_v35 = vpop.xlane.xlu0 %1215 }
 0x753   : > { %v1217_v40 = vcvt.f32.s32 %v1216_v35 }
 0x755   : > { %v1220_v36 = vadd.s32 %v1219_v43, %v1217_v40 }
 0x757   : > { %vm1221_vm3 = vcmp.eq.s32.totalorder %v1200_v32, %v1220_v36  ;;  %vm1222_vm4 = vcmp.eq.s32.totalorder %v1201_v23, %v1220_v36  ;;  %vm1223_vm10 = vcmp.eq.s32.totalorder %v1202_v1, %v1220_v36 }
 0x758   : > { %vm3459_vm14 = vmor %vm3445_vm9, %vm1221_vm3  ;;  %v1227_v41 = vsel %vm1221_vm3, 4294967295, %v1200_v32  ;;  %v1228_v2 = vsel %vm1222_vm4, 4294967295, %v1201_v23  ;;  %v1229_v3 = vsel %vm1223_vm10, 4294967295, %v1202_v1 }
 0x759   : > { %vm3465_vm15 = vmor %vm3449_vm8, %vm1222_vm4  ;;  %vm1230_vm1 = vcmp.gt.s32.totalorder %v1227_v41, %v1228_v2 }
 0x75a   : > { %vm3471_vm6 = vmor %vm3453_vm2, %vm1223_vm10  ;;  %v1231_v4 = vsel %vm1230_vm1, %v1227_v41, %v1228_v2 }
 0x75b   : > { %vm1232_vm0 = vcmp.gt.s32.totalorder %v1231_v4, %v1229_v3 }
 0x75c   : > { %v1233_v6 = vsel %vm1232_vm0, %v1231_v4, %v1229_v3 }
 0x75d   : > { %v1235_v8 = vshra.s32 %v1233_v6, 16  ;;  %v1234_v10 = vand.u32 65535, %v1233_v6 }
 0x75f   : > { %v1237_v9 = vcvt.s32.f32 %v1235_v8  ;;  %v1236_v12 = vcvt.s32.f32 %v1234_v10 }
 0x761   : > { %1238 = vmax.xlane.f32.xlu1 %v1237_v9 }
 0x7ea   : > { %v1239_v11 = vpop.xlane.xlu1 %1238 }
 0x7eb   : > { %vm1240_vm8 = vcmp.eq.f32.partialorder %v1237_v9, %v1239_v11  ;;  %v1245_v7 = vcvt.f32.s32 %v1239_v11 }
 0x7ec   : > { %v1241_v39 = vsel %vm1240_vm8, %v1236_v12, -inf }
 0x7ed   : > { %1242 = vmax.xlane.f32.xlu0 %v1241_v39  ;;  %v1246_v14 = vshll.u32 %v1245_v7, 16 }
 0x876   : > { %v1243_v13 = vpop.xlane.xlu0 %1242 }
 0x877   : > { %v1244_v15 = vcvt.f32.s32 %v1243_v13 }
 0x879   : > { %v1247_v16 = vadd.s32 %v1246_v14, %v1244_v15 }
 0x87b   : > { %vm1248_vm9 = vcmp.eq.s32.totalorder %v1227_v41, %v1247_v16  ;;  %vm1249_vm11 = vcmp.eq.s32.totalorder %v1228_v2, %v1247_v16  ;;  %vm1250_vm2 = vcmp.eq.s32.totalorder %v1229_v3, %v1247_v16 }
 0x87c   : > { %vm3477_vm12 = vmor %vm3459_vm14, %vm1248_vm9  ;;  %v1254_v18 = vsel %vm1248_vm9, 4294967295, %v1227_v41  ;;  %v1255_v19 = vsel %vm1249_vm11, 4294967295, %v1228_v2  ;;  %v1256_v24 = vsel %vm1250_vm2, 4294967295, %v1229_v3 }
 0x87d   : > { %vm3483_vm13 = vmor %vm3465_vm15, %vm1249_vm11  ;;  %vm1257_vm3 = vcmp.gt.s32.totalorder %v1254_v18, %v1255_v19 }
 0x87e   : > { %vm3489_vm4 = vmor %vm3471_vm6, %vm1250_vm2  ;;  %v1258_v44 = vsel %vm1257_vm3, %v1254_v18, %v1255_v19 }
 0x87f   : > { %vm1259_vm10 = vcmp.gt.s32.totalorder %v1258_v44, %v1256_v24 }
 0x880   : > { %v1260_v46 = vsel %vm1259_vm10, %v1258_v44, %v1256_v24 }
 0x881   : > { %v1262_v58 = vshra.s32 %v1260_v46, 16  ;;  %v1261_v57 = vand.u32 65535, %v1260_v46 }
 0x883   : > { %v1264_v47 = vcvt.s32.f32 %v1262_v58  ;;  %v1263_v49 = vcvt.s32.f32 %v1261_v57 }
 0x885   : > { %1265 = vmax.xlane.f32.xlu1 %v1264_v47 }
 0x90e   : > { %v1266_v48 = vpop.xlane.xlu1 %1265 }
 0x90f   : > { %vm1267_vm14 = vcmp.eq.f32.partialorder %v1264_v47, %v1266_v48  ;;  %v1272_v23 = vcvt.f32.s32 %v1266_v48 }
 0x910   : > { %v1268_v32 = vsel %vm1267_vm14, %v1263_v49, -inf }
 0x911   : > { %1269 = vmax.xlane.f32.xlu0 %v1268_v32  ;;  %v1273_v51 = vshll.u32 %v1272_v23, 16 }
 0x99a   : > { %v1270_v33 = vpop.xlane.xlu0 %1269 }
 0x99b   : > { %v1271_v1 = vcvt.f32.s32 %v1270_v33 }
 0x99d   : > { %v1274_v52 = vadd.s32 %v1273_v51, %v1271_v1 }
 0x99f   : > { %vm1275_vm15 = vcmp.eq.s32.totalorder %v1254_v18, %v1274_v52  ;;  %vm1276_vm1 = vcmp.eq.s32.totalorder %v1255_v19, %v1274_v52  ;;  %vm1277_vm6 = vcmp.eq.s32.totalorder %v1256_v24, %v1274_v52 }
 0x9a0   : > { %vm3495_vm0 = vmor %vm3477_vm12, %vm1275_vm15  ;;  %v1281_v54 = vsel %vm1275_vm15, 4294967295, %v1254_v18  ;;  %v1282_v60 = vsel %vm1276_vm1, 4294967295, %v1255_v19  ;;  %v1283_v62 = vsel %vm1277_vm6, 4294967295, %v1256_v24 }
 0x9a1   : > { %vm3501_vm8 = vmor %vm3483_vm13, %vm1276_vm1  ;;  %vm1284_vm9 = vcmp.gt.s32.totalorder %v1281_v54, %v1282_v60 }
 0x9a2   : > { %vm3507_vm11 = vmor %vm3489_vm4, %vm1277_vm6  ;;  %v1285_v38 = vsel %vm1284_vm9, %v1281_v54, %v1282_v60 }
 0x9a3   : > { %vm1286_vm2 = vcmp.gt.s32.totalorder %v1285_v38, %v1283_v62 }
 0x9a4   : > { %v1287_v63 = vsel %vm1286_vm2, %v1285_v38, %v1283_v62 }
 0x9a5   : > { %v1289_v35 = vshra.s32 %v1287_v63, 16  ;;  %v1288_v40 = vand.u32 65535, %v1287_v63 }
 0x9a7   : > { %v1291_v43 = vcvt.s32.f32 %v1289_v35  ;;  %v1290_v59 = vcvt.s32.f32 %v1288_v40 }
 0x9a9   : > { %1292 = vmax.xlane.f32.xlu1 %v1291_v43 }
 0xa32   : > { %v1293_v36 = vpop.xlane.xlu1 %1292 }
 0xa33   : > { %vm1294_vm12 = vcmp.eq.f32.partialorder %v1291_v43, %v1293_v36  ;;  %v1299_v2 = vcvt.f32.s32 %v1293_v36 }
 0xa34   : > { %v1295_v41 = vsel %vm1294_vm12, %v1290_v59, -inf }
 0xa35   : > { %1296 = vmax.xlane.f32.xlu0 %v1295_v41  ;;  %v1300_v42 = vshll.u32 %v1299_v2, 16 }
 0xabe   : > { %v1297_v37 = vpop.xlane.xlu0 %1296 }
 0xabf   : > { %v1298_v3 = vcvt.f32.s32 %v1297_v37 }
 0xac1   : > { %v1301_v4 = vadd.s32 %v1300_v42, %v1298_v3 }
 0xac3   : > { %vm1302_vm13 = vcmp.eq.s32.totalorder %v1281_v54, %v1301_v4  ;;  %vm1303_vm3 = vcmp.eq.s32.totalorder %v1282_v60, %v1301_v4  ;;  %vm1304_vm4 = vcmp.eq.s32.totalorder %v1283_v62, %v1301_v4 }
 0xac4   : > { %vm3513_vm10 = vmor %vm3495_vm0, %vm1302_vm13  ;;  %v1308_v8 = vsel %vm1302_vm13, 4294967295, %v1281_v54  ;;  %v1309_v9 = vsel %vm1303_vm3, 4294967295, %v1282_v60  ;;  %v1310_v12 = vsel %vm1304_vm4, 4294967295, %v1283_v62 }
 0xac5   : > { %vm3519_vm14 = vmor %vm3501_vm8, %vm1303_vm3  ;;  %vm1311_vm15 = vcmp.gt.s32.totalorder %v1308_v8, %v1309_v9 }
 0xac6   : > { %vm3525_vm1 = vmor %vm3507_vm11, %vm1304_vm4  ;;  %v1312_v39 = vsel %vm1311_vm15, %v1308_v8, %v1309_v9 }
 0xac7   : > { %vm1313_vm6 = vcmp.gt.s32.totalorder %v1312_v39, %v1310_v12 }
 0xac8   : > { %v1314_v7 = vsel %vm1313_vm6, %v1312_v39, %v1310_v12 }
 0xac9   : > { %v1316_v13 = vshra.s32 %v1314_v7, 16  ;;  %v1315_v15 = vand.u32 65535, %v1314_v7  ;;  %v2783_v7 = vld [vmem:[%s3169_s27] sm:$0xff]  ;;  %s4050_s27 = scalar_lea.vmem [#allocation8], %s3760_s11 }
 0xacb   : > { %v1318_v14 = vcvt.s32.f32 %v1316_v13  ;;  %v1317_v17 = vcvt.s32.f32 %v1315_v15 }
 0xacd   : > { %1319 = vmax.xlane.f32.xlu1 %v1318_v14 }
 0xb56   : > { %v1320_v16 = vpop.xlane.xlu1 %1319 }
 0xb57   : > { %vm1321_vm0 = vcmp.eq.f32.partialorder %v1318_v14, %v1320_v16  ;;  %v1326_v19 = vcvt.f32.s32 %v1320_v16 }
 0xb58   : > { %v1322_v18 = vsel %vm1321_vm0, %v1317_v17, -inf }
 0xb59   : > { %1323 = vmax.xlane.f32.xlu0 %v1322_v18  ;;  %v1327_v22 = vshll.u32 %v1326_v19, 16 }
 0xbe2   : > { %v1324_v20 = vpop.xlane.xlu0 %1323 }
 0xbe3   : > { %v1325_v24 = vcvt.f32.s32 %v1324_v20 }
 0xbe5   : > { %v1328_v44 = vadd.s32 %v1327_v22, %v1325_v24 }
 0xbe7   : > { %vm1329_vm8 = vcmp.eq.s32.totalorder %v1308_v8, %v1328_v44  ;;  %vm1330_vm9 = vcmp.eq.s32.totalorder %v1309_v9, %v1328_v44  ;;  %vm1331_vm11 = vcmp.eq.s32.totalorder %v1310_v12, %v1328_v44 }
 0xbe8   : > { %vm3531_vm2 = vmor %vm3513_vm10, %vm1329_vm8  ;;  %v1335_v58 = vsel %vm1329_vm8, 4294967295, %v1308_v8  ;;  %v1336_v47 = vsel %vm1330_vm9, 4294967295, %v1309_v9  ;;  %v1337_v49 = vsel %vm1331_vm11, 4294967295, %v1310_v12 }
 0xbe9   : > { %vm3537_vm12 = vmor %vm3519_vm14, %vm1330_vm9  ;;  %vm1338_vm13 = vcmp.gt.s32.totalorder %v1335_v58, %v1336_v47 }
 0xbea   : > { %vm3543_vm3 = vmor %vm3525_vm1, %vm1331_vm11  ;;  %v1339_v32 = vsel %vm1338_vm13, %v1335_v58, %v1336_v47 }
 0xbeb   : > { %vm1340_vm4 = vcmp.gt.s32.totalorder %v1339_v32, %v1337_v49 }
 0xbec   : > { %v1341_v23 = vsel %vm1340_vm4, %v1339_v32, %v1337_v49 }
 0xbed   : > { %v1343_v33 = vshra.s32 %v1341_v23, 16  ;;  %v1342_v1 = vand.u32 65535, %v1341_v23 }
 0xbef   : > { %v1345_v51 = vcvt.s32.f32 %v1343_v33  ;;  %v1344_v53 = vcvt.s32.f32 %v1342_v1 }
 0xbf1   : > { %1346 = vmax.xlane.f32.xlu1 %v1345_v51 }
 0xc7a   : > { %v1347_v52 = vpop.xlane.xlu1 %1346 }
 0xc7b   : > { %vm1348_vm10 = vcmp.eq.f32.partialorder %v1345_v51, %v1347_v52  ;;  %v1353_v60 = vcvt.f32.s32 %v1347_v52 }
 0xc7c   : > { %v1349_v54 = vsel %vm1348_vm10, %v1344_v53, -inf }
 0xc7d   : > { %1350 = vmax.xlane.f32.xlu0 %v1349_v54  ;;  %v1354_v34 = vshll.u32 %v1353_v60, 16 }
 0xd06   : > { %v1351_v26 = vpop.xlane.xlu0 %1350 }
 0xd07   : > { %v1352_v62 = vcvt.f32.s32 %v1351_v26 }
 0xd09   : > { %v1355_v38 = vadd.s32 %v1354_v34, %v1352_v62 }
 0xd0b   : > { %vm1356_vm14 = vcmp.eq.s32.totalorder %v1335_v58, %v1355_v38  ;;  %vm1357_vm15 = vcmp.eq.s32.totalorder %v1336_v47, %v1355_v38  ;;  %vm1358_vm1 = vcmp.eq.s32.totalorder %v1337_v49, %v1355_v38 }
 0xd0c   : > { %vm3549_vm6 = vmor %vm3531_vm2, %vm1356_vm14  ;;  %v1362_v35 = vsel %vm1356_vm14, 4294967295, %v1335_v58  ;;  %v1363_v43 = vsel %vm1357_vm15, 4294967295, %v1336_v47  ;;  %v1364_v59 = vsel %vm1358_vm1, 4294967295, %v1337_v49 }
 0xd0d   : > { %vm3555_vm0 = vmor %vm3537_vm12, %vm1357_vm15  ;;  %vm1365_vm8 = vcmp.gt.s32.totalorder %v1362_v35, %v1363_v43 }
 0xd0e   : > { %vm3561_vm9 = vmor %vm3543_vm3, %vm1358_vm1  ;;  %v1366_v41 = vsel %vm1365_vm8, %v1362_v35, %v1363_v43 }
 0xd0f   : > { %vm1367_vm11 = vcmp.gt.s32.totalorder %v1366_v41, %v1364_v59 }
 0xd10   : > { %v1368_v2 = vsel %vm1367_vm11, %v1366_v41, %v1364_v59 }
 0xd11   : > { %v1370_v37 = vshra.s32 %v1368_v2, 16  ;;  %v1369_v3 = vand.u32 65535, %v1368_v2 }
 0xd13   : > { %v1372_v42 = vcvt.s32.f32 %v1370_v37  ;;  %v1371_v6 = vcvt.s32.f32 %v1369_v3 }
 0xd15   : > { %1373 = vmax.xlane.f32.xlu1 %v1372_v42 }
 0xd9e   : > { %v1374_v4 = vpop.xlane.xlu1 %1373 }
 0xd9f   : > { %vm1375_vm2 = vcmp.eq.f32.partialorder %v1372_v42, %v1374_v4  ;;  %v1380_v9 = vcvt.f32.s32 %v1374_v4 }
 0xda0   : > { %v1376_v8 = vsel %vm1375_vm2, %v1371_v6, -inf }
 0xda1   : > { %1377 = vmax.xlane.f32.xlu0 %v1376_v8  ;;  %v1381_v11 = vshll.u32 %v1380_v9, 16 }
 0xe2a   : > { %v1378_v10 = vpop.xlane.xlu0 %1377 }
 0xe2b   : > { %v1379_v12 = vcvt.f32.s32 %v1378_v10 }
 0xe2d   : > { %v1382_v39 = vadd.s32 %v1381_v11, %v1379_v12  ;;  %v516_v12 = vld [vmem:[%s483_s12] sm:$0xff]  ;;  %s2813_s12 = scalar_lea.vmem %s2254_s19, 48 }
 0xe2e   : > { %p2814_p12 = scmp.ne.s32.totalorder %s2254_s19, %s2813_s12 }
 0xe2f   : > { %vm1383_vm12 = vcmp.eq.s32.totalorder %v1362_v35, %v1382_v39  ;;  %vm1384_vm13 = vcmp.eq.s32.totalorder %v1363_v43, %v1382_v39  ;;  %vm1385_vm3 = vcmp.eq.s32.totalorder %v1364_v59, %v1382_v39 }
 0xe30   : > { %vm3567_vm4 = vmor %vm3549_vm6, %vm1383_vm12  ;;  %v1389_v13 = vsel %vm1383_vm12, 4294967295, %v1362_v35  ;;  %v1390_v14 = vsel %vm1384_vm13, 4294967295, %v1363_v43  ;;  %v1391_v17 = vsel %vm1385_vm3, 4294967295, %v1364_v59  ;;  %p2815_p4 = pnand %p2814_p12, %p4143_p13 }
 0xe31   : > { %vm3573_vm10 = vmor %vm3555_vm0, %vm1384_vm13  ;;  %vm1392_vm14 = vcmp.gt.s32.totalorder %v1389_v13, %v1390_v14 }
 0xe32   : > { %vm3579_vm15 = vmor %vm3561_vm9, %vm1385_vm3  ;;  %v1393_v18 = vsel %vm1392_vm14, %v1389_v13, %v1390_v14  ;;  %p2816_p5 = pneg %p2815_p4 }
 0xe33   : > { %vm1394_vm1 = vcmp.gt.s32.totalorder %v1393_v18, %v1391_v17 }
 0xe34   : > { %v1395_v19 = vsel %vm1394_vm1, %v1393_v18, %v1391_v17  ;;  %v1505_v18 = vrot.slane %v3356_v50, 4 }
 0xe35   : > { %v1397_v20 = vshra.s32 %v1395_v19, 16  ;;  %v1396_v24 = vand.u32 65535, %v1395_v19  ;;  %v1511_v19 = vrot.slane %v3359_v55, 4 }
 0xe37   : > { %v1399_v22 = vcvt.s32.f32 %v1397_v20  ;;  %v1398_v46 = vcvt.s32.f32 %v1396_v24  ;;  %v1517_v20 = vrot.slane %v3363_v61, 4  ;;  %v1512_v24 = vmax.f32 %v3359_v55, %v1511_v19 }
 0xe39   : > { %1400 = vmax.xlane.f32.xlu1 %v1399_v22 }
 0xec2   : > { %v1401_v44 = vpop.xlane.xlu1 %1400 }
 0xec3   : > { %vm1402_vm6 = vcmp.eq.f32.partialorder %v1399_v22, %v1401_v44  ;;  %v1407_v47 = vcvt.f32.s32 %v1401_v44  ;;  %v1506_v22 = vmax.f32 %v3356_v50, %v1505_v18 }
 0xec4   : > { %v1403_v58 = vsel %vm1402_vm6, %v1398_v46, -inf  ;;  %v1513_v46 = vrot.slane %v1512_v24, 2 }
 0xec5   : > { %1404 = vmax.xlane.f32.xlu0 %v1403_v58  ;;  %v1408_v48 = vshll.u32 %v1407_v47, 16  ;;  %v1507_v44 = vrot.slane %v1506_v22, 2 }
 0xec7   : > { %v1508_v47 = vmax.f32 %v1506_v22, %v1507_v44 }
 0xf4e   : > { %v1405_v57 = vpop.xlane.xlu0 %1404 }
 0xf4f   : > { %v1406_v49 = vcvt.f32.s32 %v1405_v57  ;;  %v1514_v57 = vmax.f32 %v1512_v24, %v1513_v46  ;;  %v2983_v24 = vmov 1966171168  }
 0xf51   : > { %v1409_v32 = vadd.s32 %v1408_v48, %v1406_v49  ;;  %v1509_v49 = vrot.slane %v1508_v47, 1 }
 0xf53   : > { %vm1410_vm0 = vcmp.eq.s32.totalorder %v1389_v13, %v1409_v32  ;;  %vm1411_vm8 = vcmp.eq.s32.totalorder %v1390_v14, %v1409_v32  ;;  %vm1412_vm9 = vcmp.eq.s32.totalorder %v1391_v17, %v1409_v32  ;;  %v1515_v32 = vrot.slane %v1514_v57, 1 }
 0xf54   : > { %vm3585_vm11 = vmor %vm3567_vm4, %vm1410_vm0  ;;  %v1416_v33 = vsel %vm1410_vm0, 4294967295, %v1389_v13  ;;  %v1417_v51 = vsel %vm1411_vm8, 4294967295, %v1390_v14  ;;  %v1418_v53 = vsel %vm1412_vm9, 4294967295, %v1391_v17  ;;  %v1637_v13 = vcvt.s32.f32 %v2783_v7 }
 0xf55   : > { %vm3591_vm2 = vmor %vm3573_vm10, %vm1411_vm8  ;;  %vm1419_vm12 = vcmp.gt.s32.totalorder %v1416_v33, %v1417_v51 }
 0xf56   : > { %vm3597_vm13 = vmor %vm3579_vm15, %vm1412_vm9  ;;  %v1420_v54 = vsel %vm1419_vm12, %v1416_v33, %v1417_v51 }
 0xf57   : > { %vm1421_vm3 = vcmp.gt.s32.totalorder %v1420_v54, %v1418_v53 }
 0xf58   : > { %v1422_v60 = vsel %vm1421_vm3, %v1420_v54, %v1418_v53 }
 0xf59   : > { %v1424_v26 = vshra.s32 %v1422_v60, 16  ;;  %v1423_v62 = vand.u32 65535, %v1422_v60 }
 0xf5b   : > { %v1426_v34 = vcvt.s32.f32 %v1424_v26  ;;  %v1425_v63 = vcvt.s32.f32 %v1423_v62 }
 0xf5d   : > { %1427 = vmax.xlane.f32.xlu1 %v1426_v34 }
 0xfe6   : > { %v1428_v38 = vpop.xlane.xlu1 %1427 }
 0xfe7   : > { %vm1429_vm4 = vcmp.eq.f32.partialorder %v1426_v34, %v1428_v38  ;;  %v1434_v43 = vcvt.f32.s32 %v1428_v38 }
 0xfe8   : > { %v1430_v35 = vsel %vm1429_vm4, %v1425_v63, -inf }
 0xfe9   : > { %1431 = vmax.xlane.f32.xlu0 %v1430_v35  ;;  %v1435_v36 = vshll.u32 %v1434_v43, 16 }
0x1072   : > { %v1432_v40 = vpop.xlane.xlu0 %1431 }
0x1073   : > { %v1433_v59 = vcvt.f32.s32 %v1432_v40 }
0x1075   : > { %v1436_v41 = vadd.s32 %v1435_v36, %v1433_v59 }
0x1077   : > { %vm1437_vm10 = vcmp.eq.s32.totalorder %v1416_v33, %v1436_v41  ;;  %vm1438_vm14 = vcmp.eq.s32.totalorder %v1417_v51, %v1436_v41  ;;  %vm1439_vm15 = vcmp.eq.s32.totalorder %v1418_v53, %v1436_v41 }
0x1078   : > { %vm3603_vm1 = vmor %vm3585_vm11, %vm1437_vm10  ;;  %v3607_v37 = vsel %vm1437_vm10, 4294967295, %v1416_v33  ;;  %v3609_v42 = vsel %vm1438_vm14, 4294967295, %v1417_v51  ;;  %v3625_v6 = vsel %vm1439_vm15, 4294967295, %v1418_v53  ;;  %vm1473_vm11 = vcmp.gt.f32.partialorder %v516_v12, 0.0 }
0x1079   : > { %vm3613_vm6 = vmor %vm3591_vm2, %vm1438_vm14  ;;  %vm1446_vm0 = vcmp.gt.s32.totalorder %v3607_v37, %v3609_v42  ;;  %v1474_v39 = vsel %vm1473_vm11, 1, %v2968_v0  ;;  %v1510_v33 = vmax.f32 %v1508_v47, %v1509_v49  ;;  %v1516_v51 = vmax.f32 %v1514_v57, %v1515_v32 }
0x107a   : > { %vm3621_vm8 = vmor %vm3597_vm13, %vm1439_vm15  ;;  %v1447_v8 = vsel %vm1446_vm0, %v3607_v37, %v3609_v42 }
0x107b   : > { %vm1448_vm9 = vcmp.gt.s32.totalorder %v1447_v8, %v3625_v6  ;;  %vm1523_vm12 = vcmp.eq.f32.partialorder %v3356_v50, %v1510_v33  ;;  %vm1524_vm13 = vcmp.eq.f32.partialorder %v3359_v55, %v1516_v51 }
0x107c   : > { %v1449_v9 = vsel %vm1448_vm9, %v1447_v8, %v3625_v6  ;;  %v1526_v52 = vsel %vm1523_vm12, %v3272_v31, 8  ;;  %v1527_v53 = vsel %vm1524_vm13, %v3272_v31, 8 }
0x107d   : > { %v1451_v10 = vshra.s32 %v1449_v9, 16  ;;  %v1450_v14 = vand.u32 65535, %v1449_v9  ;;  %v1529_v60 = vrot.slane %v1526_v52, 4  ;;  %v1538_v26 = vrot.slane %v1527_v53, 4 }
0x107f   : > { %v1453_v11 = vcvt.s32.f32 %v1451_v10  ;;  %v1452_v16 = vcvt.s32.f32 %v1450_v14  ;;  %vm1530_vm4 = vcmp.lt.s32.totalorder %v1526_v52, %v1529_v60  ;;  %vm1539_vm10 = vcmp.lt.s32.totalorder %v1527_v53, %v1538_v26 }
0x1080   : > { %v1531_v38 = vsel %vm1530_vm4, %v1526_v52, %v1529_v60  ;;  %v1540_v63 = vsel %vm1539_vm10, %v1527_v53, %v1538_v26 }
0x1081   : > { %1454 = vmax.xlane.f32.xlu1 %v1453_v11  ;;  %v1532_v59 = vrot.slane %v1531_v38, 2  ;;  %v1541_v41 = vrot.slane %v1540_v63, 2 }
0x1083   : > { %vm1533_vm11 = vcmp.lt.s32.totalorder %v1531_v38, %v1532_v59  ;;  %vm1542_vm12 = vcmp.lt.s32.totalorder %v1540_v63, %v1541_v41 }
0x1084   : > { %v1534_v2 = vsel %vm1533_vm11, %v1531_v38, %v1532_v59 }
0x1085   : > { %v1535_v4 = vrot.slane %v1534_v2, 1 }
0x1092   : > { %1476 = vperm.xlu1 %2753, %v1474_v39  }
0x10b5   : > { %1902 = vxpose.xlu1.c.b16.start.end [1/1] (short) (narrow) %v3227_v30, 80  ;;  %v1518_v30 = vmax.f32 %v3363_v61, %v1517_v20 }
0x10b7   : > { %v1519_v58 = vrot.slane %v1518_v30, 2 }
0x10b9   : > { %v1520_v48 = vmax.f32 %v1518_v30, %v1519_v58  ;;  %v2104_v30 = vunpack.c.l.s4 %v2983_v24 }
0x10bb   : > { %v1521_v23 = vrot.slane %v1520_v48, 1  ;;  %v2105_v33 = vunpack.c.0.s8 %v2104_v30 }
0x10bd   : > { %v1522_v1 = vmax.f32 %v1520_v48, %v1521_v23  ;;  %v3701_v38 = vsub.s32 %v2105_v33, %v3272_v31 }
0x10bf   : > { %vm1525_vm3 = vcmp.eq.f32.partialorder %v3363_v61, %v1522_v1 }
0x10c0   : > { %v1528_v54 = vsel %vm1525_vm3, %v3272_v31, 8 }
0x10c1   : > { %v1547_v34 = vrot.slane %v1528_v54, 4 }
0x10c3   : > { %vm1548_vm14 = vcmp.lt.s32.totalorder %v1528_v54, %v1547_v34 }
0x10c4   : > { %v1549_v35 = vsel %vm1548_vm14, %v1528_v54, %v1547_v34  ;;  %vm4139_vm14 = vnez %v4072_v27 }
0x10c5   : > { %v1550_v8 = vrot.slane %v1549_v35, 2 }
0x10c7   : > { %vm1551_vm13 = vcmp.lt.s32.totalorder %v1549_v35, %v1550_v8 }
0x10c8   : > { %v1552_v3 = vsel %vm1551_vm13, %v1549_v35, %v1550_v8 }
0x10c9   : > { %1640 = vperm.xlu1 %2753, %v1637_v13   ;;  %v1553_v39 = vrot.slane %v1552_v3, 1 }
0x10cb   : > { %vm1554_vm11 = vcmp.lt.s32.totalorder %v1552_v3, %v1553_v39 }
0x10cc   : > { %v1555_v46 = vsel %vm1554_vm11, %v1552_v3, %v1553_v39  ;;  %vm3740_vm11 = vcmp.lt.s32.totalorder %v517_v25, 384 }
0x10cd   : > { %vm1558_vm13 = vcmp.eq.s32.totalorder %v3272_v31, %v1555_v46 }
0x10ce   : > { %v1561_v60 = vsel %vm1558_vm13, 1.0, %v2972_v5 }
0x110a   : > { %v1455_v15 = vpop.xlane.xlu1 %1454 }
0x110b   : > { %vm1456_vm2 = vcmp.eq.f32.partialorder %v1453_v11, %v1455_v15  ;;  %v1461_v62 = vcvt.f32.s32 %v1455_v15 }
0x110c   : > { %v1457_v17 = vsel %vm1456_vm2, %v1452_v16, -inf }
0x110d   : > { %1458 = vmax.xlane.f32.xlu0 %v1457_v17  ;;  %v1462_v40 = vshll.u32 %v1461_v62, 16 }
0x1196   : > { %v1459_v43 = vpop.xlane.xlu0 %1458 }
0x1197   : > { %v1460_v36 = vcvt.f32.s32 %v1459_v43 }
0x1199   : > { %v1463_v9 = vadd.s32 %v1462_v40, %v1460_v36 }
0x119b   : > { %vm1464_vm15 = vcmp.eq.s32.totalorder %v3607_v37, %v1463_v9  ;;  %vm1465_vm0 = vcmp.eq.s32.totalorder %v3609_v42, %v1463_v9  ;;  %vm1466_vm9 = vcmp.eq.s32.totalorder %v3625_v6, %v1463_v9  ;;  %v1477_v37 = vpop.permute.xlu1 %1476  ;;  %v1543_v6 = vsel %vm1542_vm12, %v1540_v63, %v1541_v41 }
0x119c   : > { %vm3655_vm2 = vmor %vm3603_vm1, %vm1464_vm15  ;;  %vm1478_vm10 = vcmp.eq.s32.totalorder %v1477_v37, 1  ;;  %v1544_v12 = vrot.slane %v1543_v6, 1 }
0x119d   : > { %vm3661_vm3 = vmor %vm3613_vm6, %vm1465_vm0 }
0x119e   : > { %vm3667_vm4 = vmor %vm3621_vm8, %vm1466_vm9  ;;  %vm1545_vm9 = vcmp.lt.s32.totalorder %v1543_v6, %v1544_v12 }
0x119f   : > { %vm1470_vm1 = vmand %vm3655_vm2, %vm3385_vm5  ;;  %v3685_v56 = vpop.trf.xlu1  ;;  %v1546_v44 = vsel %vm1545_vm9, %v1543_v6, %v1544_v12 }
0x11a0   : > { %vm1471_vm6 = vmand %vm3661_vm3, %vm3392_vm7  ;;  %vm1536_vm7 = vcmp.lt.s32.totalorder %v1534_v2, %v1535_v4  ;;  %vm1557_vm12 = vcmp.eq.s32.totalorder %v3272_v31, %v1546_v44 }
0x11a1   : > { %vm1472_vm8 = vmand %vm3667_vm4, %vm4139_vm14  ;;  %v1537_v20 = vsel %vm1536_vm7, %v1534_v2, %v1535_v4  ;;  %v1560_v54 = vsel %vm1557_vm12, 1.0, %v2972_v5 }
0x11a2   : > { %vm1479_vm15 = vmand %vm1470_vm1, %vm1478_vm10  ;;  %vm1556_vm2 = vcmp.eq.s32.totalorder %v3272_v31, %v1537_v20 }
0x11a3   : > { %vm1480_vm0 = vmand %vm1471_vm6, %vm1478_vm10  ;;  %v1482_v29 = vsel %vm1479_vm15, 1.0, %v2972_v5  ;;  %v3688_v57 = vpop.trf.xlu1  ;;  %v1559_v52 = vsel %vm1556_vm2, 1.0, %v2972_v5 }
0x11a4   : > { %vm1481_vm5 = vmand %vm1472_vm8, %vm1478_vm10  ;;  %v1483_v7 = vsel %vm1480_vm0, 1.0, %v2972_v5  ;;  %v1487_v13 = vrot.slane %v1482_v29, 4 }
0x11a5   : > { %v1484_v14 = vsel %vm1481_vm5, 1.0, %v2972_v5  ;;  %v1493_v15 = vrot.slane %v1483_v7, 4 }
0x11a6   : > { %v1488_v27 = vadd.f32 %v1487_v13, %v1482_v29  ;;  %v1499_v16 = vrot.slane %v1484_v14, 4 }
0x11a7   : > { %v1494_v17 = vadd.f32 %v1493_v15, %v1483_v7  ;;  %v3696_v34 = vpop.trf.xlu1 }
0x11a8   : > { %v1489_v18 = vrot.slane %v1488_v27, 2  ;;  %v1500_v19 = vadd.f32 %v1499_v16, %v1484_v14 }
0x11a9   : > { %v1495_v22 = vrot.slane %v1494_v17, 2 }
0x11aa   : > { %v1490_v58 = vadd.f32 %v1489_v18, %v1488_v27  ;;  %v1501_v47 = vrot.slane %v1500_v19, 2 }
0x11ab   : > { %v1496_v48 = vadd.f32 %v1495_v22, %v1494_v17  ;;  %v3723_v4 = vpop.trf.xlu1 }
0x11ac   : > { %v1491_v49 = vrot.slane %v1490_v58, 1  ;;  %v1502_v32 = vadd.f32 %v1501_v47, %v1500_v19 }
0x11ad   : > { %v1497_v23 = vrot.slane %v1496_v48, 1 }
0x11ae   : > { %v1492_v51 = vadd.f32 %v1491_v49, %v1490_v58  ;;  %v1503_v1 = vrot.slane %v1502_v32, 1 }
0x11af   : > { %v1498_v53 = vadd.f32 %v1497_v23, %v1496_v48  ;;  %v3735_v46 = vpop.trf.xlu1 }
0x11b0   : > { %v1504_v26 = vadd.f32 %v1503_v1, %v1502_v32  ;;  %vm1562_vm3 = vcmp.gt.f32.partialorder %v1492_v51, 1.0 }
0x11b1   : > { %vm1563_vm4 = vcmp.gt.f32.partialorder %v1498_v53, 1.0  ;;  %v3698_v62 = vsel %vm1562_vm3, %v1559_v52, %v1482_v29 }
0x11b2   : > { %vm1564_vm10 = vcmp.gt.f32.partialorder %v1504_v26, 1.0  ;;  %v3703_v63 = vsel %vm1563_vm4, %v1560_v54, %v1483_v7  ;;  %v1574_v35 = vrot.slane %v3698_v62, 4  ;;  %vm1592_vm1 = vcmp.gt.f32.partialorder %v3698_v62, 0.0 }
0x11b3   : > { %v3707_v43 = vsel %vm1564_vm10, %v1561_v60, %v1484_v14  ;;  %v1580_v40 = vrot.slane %v3703_v63, 4  ;;  %vm1593_vm6 = vcmp.gt.f32.partialorder %v3703_v63, 0.0  ;;  %v1595_v36 = vsel %vm1592_vm1, %v3272_v31, 8 }
0x11b4   : > { %v1575_v59 = vadd.f32 %v1574_v35, %v3698_v62  ;;  %v1586_v41 = vrot.slane %v3707_v43, 4  ;;  %vm1594_vm14 = vcmp.gt.f32.partialorder %v3707_v43, 0.0  ;;  %v1596_v8 = vsel %vm1593_vm6, %v3272_v31, 8  ;;  %v1641_v35 = vpop.permute.xlu1 %1640 }
0x11b5   : > { %v1581_v9 = vadd.f32 %v1580_v40, %v3703_v63  ;;  %v1597_v10 = vsel %vm1594_vm14, %v3272_v31, 8  ;;  %v1598_v11 = vrot.slane %v1595_v36, 4  ;;  %v1607_v37 = vrot.slane %v1596_v8, 4 }
0x11b6   : > { %v1576_v42 = vrot.slane %v1575_v59, 2  ;;  %v1587_v2 = vadd.f32 %v1586_v41, %v3707_v43  ;;  %v1616_v6 = vrot.slane %v1597_v10, 4  ;;  %v3721_v3 = vmul.f32 %v3698_v62, %v3378_v21 }
0x11b7   : > { %v1582_v12 = vrot.slane %v1581_v9, 2  ;;  %vm1599_vm8 = vcmp.lt.s32.totalorder %v1595_v36, %v1598_v11  ;;  %vm1608_vm15 = vcmp.lt.s32.totalorder %v1596_v8, %v1607_v37  ;;  %v3727_v39 = vmul.f32 %v3703_v63, %v3383_v28 }
0x11b8   : > { %v1577_v29 = vadd.f32 %v1576_v42, %v1575_v59  ;;  %v1588_v7 = vrot.slane %v1587_v2, 2  ;;  %v1600_v13 = vsel %vm1599_vm8, %v1595_v36, %v1598_v11  ;;  %v1609_v14 = vsel %vm1608_vm15, %v1596_v8, %v1607_v37 }
0x11b9   : > { %v1583_v15 = vadd.f32 %v1582_v12, %v1581_v9  ;;  %v1601_v27 = vrot.slane %v1600_v13, 2  ;;  %v1610_v16 = vrot.slane %v1609_v14, 2  ;;  %vm1617_vm0 = vcmp.lt.s32.totalorder %v1597_v10, %v1616_v6 }
0x11ba   : > { %v1578_v17 = vrot.slane %v1577_v29, 1  ;;  %v1589_v21 = vadd.f32 %v1588_v7, %v1587_v2  ;;  %v1618_v18 = vsel %vm1617_vm0, %v1597_v10, %v1616_v6  ;;  %v3731_v19 = vmul.f32 %v3707_v43, %v3390_v45 }
0x11bb   : > { %v1584_v20 = vrot.slane %v1583_v15, 1  ;;  %vm1602_vm5 = vcmp.lt.s32.totalorder %v1600_v13, %v1601_v27  ;;  %vm1611_vm7 = vcmp.lt.s32.totalorder %v1609_v14, %v1610_v16  ;;  %v1619_v28 = vrot.slane %v1618_v18, 2 }
0x11bc   : > { %v3733_v22 = vadd.f32 %v1578_v17, %v1577_v29  ;;  %v1590_v24 = vrot.slane %v1589_v21, 1  ;;  %v1603_v30 = vsel %vm1602_vm5, %v1600_v13, %v1601_v27  ;;  %v1612_v44 = vsel %vm1611_vm7, %v1609_v14, %v1610_v16 }
0x11bd   : > { %v3737_v58 = vadd.f32 %v1584_v20, %v1583_v15  ;;  %v1604_v47 = vrot.slane %v1603_v30, 1  ;;  %v1613_v48 = vrot.slane %v1612_v44, 1  ;;  %vm1620_vm9 = vcmp.lt.s32.totalorder %v1618_v18, %v1619_v28 }
0x11be   : > { %v3744_v49 = vadd.f32 %v1590_v24, %v1589_v21  ;;  %v1621_v32 = vsel %vm1620_vm9, %v1618_v18, %v1619_v28  ;;  %vm1625_vm2 = vcmp.gt.f32.partialorder %v3733_v22, 0.0  ;;  %v1858_v23 = vmax.f32 %v3721_v3, %v3727_v39 }
0x11bf   : > { %vm1605_vm12 = vcmp.lt.s32.totalorder %v1603_v30, %v1604_v47  ;;  %vm1614_vm13 = vcmp.lt.s32.totalorder %v1612_v44, %v1613_v48  ;;  %v1622_v33 = vrot.slane %v1621_v32, 1  ;;  %vm1626_vm3 = vcmp.gt.f32.partialorder %v3737_v58, 0.0 }
0x11c0   : > { %v1606_v51 = vsel %vm1605_vm12, %v1603_v30, %v1604_v47  ;;  %v1615_v1 = vsel %vm1614_vm13, %v1612_v44, %v1613_v48  ;;  %vm1627_vm4 = vcmp.gt.f32.partialorder %v3744_v49, 0.0  ;;  %v2169_v25 = vcombine.low %v3733_v22, %v3737_v58 }
0x11c1   : > { %vm1623_vm10 = vcmp.lt.s32.totalorder %v1621_v32, %v1622_v33  ;;  %v1628_v52 = vsel %vm1625_vm2, %v1606_v51, 0  ;;  %v1629_v53 = vsel %vm1626_vm3, %v1615_v1, 0  ;;  %v2183_v54 = vrot.slane %v3744_v49, %v3701_v38 }
0x11c2   : > { %v1624_v60 = vsel %vm1623_vm10, %v1621_v32, %v1622_v33  ;;  %vm1631_vm1 = vcmp.eq.s32.totalorder %v3272_v31, %v1628_v52  ;;  %vm1632_vm6 = vcmp.eq.s32.totalorder %v3272_v31, %v1629_v53  ;;  %v2176_v26 = vrot.slane %v2169_v25, %v3701_v38 }
0x11c3   : > { %v1630_v40 = vsel %vm1627_vm4, %v1624_v60, 0  ;;  %v3768_v36 = vsel %vm1631_vm1, 1.0, %v2972_v5  ;;  %v3771_v59 = vsel %vm1632_vm6, 1.0, %v2972_v5  ;;  %v2194_v41 = vcombine.low %v1628_v52, %v1629_v53 }
0x11c4   : > { %v2984_v8 = vmov 1.0   ;;  %vm1633_vm14 = vcmp.eq.s32.totalorder %v3272_v31, %v1630_v40  ;;  %v1643_v9 = vmul.f32 %v1641_v35, %v3768_v36  ;;  %v1644_v10 = vmul.f32 %v1641_v35, %v3771_v59 }
0x11c5   : > { %2566 = vmatprep.subr.msk.mxu0 %vm1632_vm6, %v2984_v8  ;;  %v2184_v11 = vcombine.low %v2176_v26, %v2183_v54  ;;  %v3777_v37 = vsel %vm1633_vm14, 1.0, %v2972_v5  ;;  %v2201_v42 = vrot.slane %v2194_v41, %v3701_v38  ;;  %v2208_v2 = vrot.slane %v1630_v40, %v3701_v38  ;;  %2619 = vmatprep.subr.msk.mxu1 %vm1633_vm14, %v2984_v8  ;;  %v2784_v41 = vld [vmem:[%s3163_s21] sm:$0xff]  ;;  %s3868_s21 = smul.u32 48, %s3067_s17 }
0x11c6   : > { %2567 = vmatpush1.msk.msra.mxu0 %vm1631_vm1, %v2984_v8  ;;  %v1859_v6 = vmax.f32 %v1858_v23, %v3731_v19  ;;  %v1645_v31 = vmul.f32 %v1641_v35, %v3777_v37  ;;  %v1646_v12 = vrot.slane %v1643_v9, 4  ;;  %v1652_v29 = vrot.slane %v1644_v10, 4  ;;  %2620 = vmatpush3.msk.msra.mxu1 %vm1633_vm14, %v2984_v8 }
0x11c7   : > { %2624 = vmatprep.subr.bf16.mxu0 %v2972_v5  ;;  %v2191_v7 = vrot.slane %v2184_v11, %v3701_v38  ;;  %v2209_v13 = vcombine.low %v2201_v42, %v2208_v2  ;;  %v1862_v14 = vmul.f32 %v3698_v62, %v3356_v50  ;;  %v1863_v15 = vmul.f32 %v3703_v63, %v3359_v55  ;;  %s2251_s26 = scalar_lea.hbm %s4036_s6, %s3868_s21 }
0x11c8   : > { %1860 = vmax.xlane.f32.xlu0 %v1859_v6  ;;  %v1647_v27 = vadd.f32 %v1646_v12, %v1643_v9  ;;  %v1653_v16 = vadd.f32 %v1652_v29, %v1644_v10  ;;  %v1658_v17 = vrot.slane %v1645_v31, 4  ;;  %v1864_v18 = vmul.f32 %v3707_v43, %v3363_v61 }
0x11c9   : > { %2193 = vst.msk [vmem:[%s4050_s27] sm:$0x7] %vm3740_vm11, %v2191_v7  ;;  %v2216_v21 = vrot.slane %v2209_v13, %v3701_v38  ;;  %v1865_v20 = vmax.f32 %v1862_v14, %v1863_v15  ;;  %vm1933_vm8 = vcmask 1043456   ;;  %vm1696_vm15 = vcmask 64512   ;;  %s2985_s27 = smov [#allocation5]  }
0x11ca   : > { %v1648_v28 = vrot.slane %v1647_v27, 2  ;;  %v1654_v24 = vrot.slane %v1653_v16, 2  ;;  %v1659_v50 = vadd.f32 %v1658_v17, %v1645_v31  ;;  %vm4142_vm0 = vmmov 0   ;;  %s2817_s28 = sshll.u32 %s2985_s27, 4  ;;  %s2818_s28 = int_to_ptr.vmem [resolvable:$false] %s2817_s28 }
0x11cb   : > { %v1866_v62 = vmax.f32 %v1865_v20, %v1864_v18  ;;  %2217 = vst.msk [vmem:[%s4052_s20] sm:$0x7] %vm3740_vm11, %v2216_v21  ;;  %s2819_s20 = scalar_lea.vmem %s2818_s28, 96  ;;  %p2820_p7 = scmp.lt.s32.totalorder %s2254_s19, %s2818_s28 }
0x11cc   : > { %v1649_v55 = vadd.f32 %v1648_v28, %v1647_v27  ;;  %v1655_v63 = vadd.f32 %v1654_v24, %v1653_v16  ;;  %v1660_v30 = vrot.slane %v1659_v50, 2  ;;  %p2821_p8 = scmp.lt.s32.totalorder %s2819_s20, %s2813_s12 }
0x11cd   : > { %1867 = vmax.xlane.f32.xlu0 %v1866_v62 }
0x11ce   : > { %v1650_v44 = vrot.slane %v1649_v55, 1  ;;  %v1656_v47 = vrot.slane %v1655_v63, 1  ;;  %v1661_v48 = vadd.f32 %v1660_v30, %v1659_v50  ;;  %p2822_p10 = por %p2821_p8, %p2820_p7 }
0x11d0   : > { %v1651_v32 = vadd.f32 %v1650_v44, %v1649_v55  ;;  %v1657_v61 = vadd.f32 %v1656_v47, %v1655_v63  ;;  %v1662_v43 = vrot.slane %v1661_v48, 1  ;;  %p2823_p0 = pnand %p2822_p10, %p2816_p5 }
0x11d2   : > { %v1663_v23 = vadd.f32 %v1662_v43, %v1661_v48  ;;  %v2652_v33 = vtrunc.f32 %v1651_v32  ;;  %v2654_v51 = vtrunc.f32 %v1657_v61 }
0x11d4   : > { %v2653_v1 = vcvt.f32.s32 %v2652_v33  ;;  %v2655_v25 = vcvt.f32.s32 %v2654_v51  ;;  %v2656_v52 = vtrunc.f32 %v1663_v23 }
0x11d6   : > { %v2657_v53 = vcvt.f32.s32 %v2656_v52  ;;  %v2102_v54 = vcombine.low %v2653_v1, %v2655_v25 }
0x11d8   : > { %v2109_v60 = vrot.slane %v2102_v54, %v3701_v38  ;;  %v2116_v26 = vrot.slane %v2657_v53, %v3701_v38 }
0x11da   : > { %v2117_v35 = vcombine.low %v2109_v60, %v2116_v26 }
0x11dc   : > { %v2124_v40 = vrot.slane %v2117_v35, %v3701_v38 }
0x11de   : > { %2129 = vst.msk [vmem:[%s438_s15] sm:$0x7] %vm3740_vm11, %v2124_v40 }
0x11fa   : > { %1664 = vxpose.xlu0.b32.start.end [1/1] (short) (narrow) %v2784_v41, 16 }
0x1223   : > { %2754 = vset.pattern.permute.xlu0 %v2968_v0 }
0x1251   : > { %v1861_v8 = vpop.xlane.xlu0 %1860 }
0x1252   : > { %v1869_v9 = vadd.f32 1e-09, %v1861_v8 }
0x1254   : > { %2781 = vrcp.f32 %v1869_v9 }
0x1256   : > { %v1868_v11 = vpop.xlane.xlu0 %1867 }
0x1261   : > { %v2782_v10 = vpop.eup %2781 }
0x1262   : > { %v1871_v42 = vmul.f32 %v2782_v10, %v1868_v11 }
0x1264   : > { %v1872_v2 = vmul.f32 %v1871_v42, %v3721_v3  ;;  %v1873_v6 = vmul.f32 %v1871_v42, %v3727_v39  ;;  %v1874_v38 = vmul.f32 %v1871_v42, %v3731_v19 }
0x1266   : > { %v1875_v31 = vrot.slane %v1872_v2, 4  ;;  %v1881_v45 = vrot.slane %v1873_v6, 4  ;;  %v1887_v12 = vrot.slane %v1874_v38, 4 }
0x1268   : > { %v1876_v29 = vmax.f32 %v1872_v2, %v1875_v31  ;;  %v1882_v7 = vmax.f32 %v1873_v6, %v1881_v45  ;;  %v1888_v13 = vmax.f32 %v1874_v38, %v1887_v12 }
0x126a   : > { %v1877_v14 = vrot.slane %v1876_v29, 2  ;;  %v1883_v15 = vrot.slane %v1882_v7, 2  ;;  %v1889_v27 = vrot.slane %v1888_v13, 2 }
0x126c   : > { %v1878_v16 = vmax.f32 %v1876_v29, %v1877_v14  ;;  %v1884_v17 = vmax.f32 %v1882_v7, %v1883_v15  ;;  %v1890_v21 = vmax.f32 %v1888_v13, %v1889_v27 }
0x126e   : > { %v1885_v18 = vrot.slane %v1884_v17, 1  ;;  %v1891_v20 = vrot.slane %v1890_v21, 1  ;;  %v1879_v28 = vrot.slane %v1878_v16, 1 }
0x1270   : > { %v1886_v3 = vmax.f32 %v1884_v17, %v1885_v18  ;;  %v1892_v24 = vmax.f32 %v1890_v21, %v1891_v20  ;;  %v1880_v39 = vmax.f32 %v1878_v16, %v1879_v28 }
0x1272   : > { %v1894_v19 = vsel %vm1626_vm3, %v1886_v3, 0.0  ;;  %v1895_v50 = vsel %vm1627_vm4, %v1892_v24, 0.0  ;;  %v1893_v62 = vsel %vm1625_vm2, %v1880_v39, 0.0 }
0x1273   : > { %v1897_v55 = vmul.f32 %v1894_v19, %v3771_v59  ;;  %v1898_v63 = vmul.f32 %v1895_v50, %v3777_v37  ;;  %v1896_v30 = vmul.f32 %v1893_v62, %v3768_v36 }
0x1275   : > { %v1900_v44 = vpack.c.bf16 %v1897_v55, %v1897_v55  ;;  %v1901_v47 = vpack.c.bf16 %v1898_v63, %v1898_v63  ;;  %v1899_v22 = vpack.c.bf16 %v1896_v30, %v1896_v30 }
0x1276   : > { %v1680_v48 = vpop.trf.xlu0 }
0x1277   : > { %2573 = vmatprep.subr.msk.bf16.mxu1 %vm1933_vm8, %v1900_v44  ;;  %v1941_v58 = vsel %vm1933_vm8, %v1901_v47, 0  ;;  %2568 = vmatmul.mubr.msk.f32.vlgmr.msra.gmra.mxu0 %vm1696_vm15, %v1680_v48  ;;  %v1935_v36 = vsel %vm1933_vm8, %v1899_v22, 0 }
0x1278   : > { %2621 = vmatprep.mubr.msk.f32.mxu1 %vm1696_vm15, %v1680_v48  ;;  %2625 = vmatpush3.bf16.msra.mxu0 %v1941_v58 }
0x1279   : > { %1773 = vmatprep.mubr.f32.mxu0 %v2972_v5 }
0x127a   : > { %v1681_v49 = vpop.trf.xlu0 }
0x127b   : > { %2569 = vmatmul.mubr.msk.f32.gmra.mxu0 %vm1696_vm15, %v1681_v49  ;;  %2622 = vmatmul.mubr.msk.f32.vlgmr.msra.gmra.mxu1 %vm1696_vm15, %v1681_v49 }
0x127c   : > { %1958 = vmatpush1.bf16.msra.mxu1 %v1935_v36  ;;  %1975 = vmatprep.mubr.bf16.mxu1 %v2968_v0 }
0x127d   : > { %2626 = vmatprep.mubr.msk.bf16.mxu0 %vm4142_vm0, %v2972_v5 }
0x127f   : > { %2574 = vmatmul.mubr.msk.bf16.vlgmr.msra.gmra.mxu1 %vm1696_vm15, %v3685_v56  ;;  %2627 = vmatmul.mubr.msk.bf16.vlgmr.msra.gmra.mxu0 %vm1696_vm15, %v3685_v56 }
0x1280   : > { %1985 = vmatprep.mubr.bf16.mxu1 %v2968_v0  ;;  %2630 = vmatprep.mubr.msk.bf16.mxu0 %vm4142_vm0, %v2972_v5 }
0x1287   : > { %2575 = vmatmul.mubr.msk.bf16.gmra.mxu1 %vm1696_vm15, %v3688_v57  ;;  %2631 = vmatmul.mubr.msk.bf16.gmra.mxu0 %vm1696_vm15, %v3688_v57 }
0x1288   : > { %1995 = vmatprep.mubr.bf16.mxu1 %v2968_v0  ;;  %2634 = vmatprep.mubr.msk.bf16.mxu0 %vm4142_vm0, %v2972_v5 }
0x128f   : > { %2576 = vmatmul.mubr.msk.bf16.gmra.mxu1 %vm1696_vm15, %v3696_v34  ;;  %2635 = vmatmul.mubr.msk.bf16.gmra.mxu0 %vm1696_vm15, %v3696_v34 }
0x1290   : > { %2005 = vmatprep.mubr.bf16.mxu1 %v2968_v0  ;;  %2638 = vmatprep.mubr.msk.bf16.mxu0 %vm4142_vm0, %v2972_v5 }
0x1297   : > { %2577 = vmatmul.mubr.msk.bf16.gmra.mxu1 %vm1696_vm15, %v3723_v4  ;;  %2639 = vmatmul.mubr.msk.bf16.gmra.mxu0 %vm1696_vm15, %v3723_v4 }
0x1298   : > { %2015 = vmatprep.mubr.bf16.mxu1 %v2968_v0  ;;  %2642 = vmatprep.mubr.msk.bf16.mxu0 %vm4142_vm0, %v2972_v5 }
0x129f   : > { %2578 = vmatmul.mubr.msk.bf16.gmra.mxu1 %vm1696_vm15, %v3735_v46  ;;  %2643 = vmatmul.mubr.msk.bf16.gmra.mxu0 %vm1696_vm15, %v3735_v46 }
0x12a0   : > { %2826 = shalt.err (!%p2823_p0)
}
0x12a1   : > { %s2827_s15 = scalar_lea.hbm %s2251_s26, 48  ;;  %s2831_s0 = scalar_lea.hbm %s4036_s6, 96 }
0x12a2   : > { %p2828_p2 = scmp.ne.s32.totalorder %s2251_s26, %s2827_s15  ;;  %p2832_p3 = scmp.lt.s32.totalorder %s2251_s26, %s4036_s6 }
0x12a3   : > { %p2833_p6 = scmp.lt.s32.totalorder %s2831_s0, %s2827_s15 }
0x12a4   : > { %p2829_p9 = pnand %p2828_p2, %p4143_p13 }
0x12a5   : > { %p2834_p11 = por %p2833_p6, %p2832_p3 }
0x12a6   : > { %p2830_p1 = pneg %p2829_p9 }
0x12a8   : > { %p2835_p12 = pnand %p2834_p11, %p2830_p1 }
0x12aa   : > { %2838 = shalt.err (!%p2835_p12)
}
0x12ab   : > { %2664 = dma.vmem_to_hbm [thread:$0]  (%p4143_p13), %s2254_s19, 48, %s2251_s26, %s2219_s23  }
0x12ac   : > { %s2298_s20 = scalar_lea.hbm %s4040_s10, %s3868_s21  ;;  %s4144_s12 = scalar_lea.vmem [#allocation9], %s3760_s11 }
0x12ad   : > { %s2300_s29 = sshll.u32 %s4144_s12, 4  ;;  %s2239_s1 = scalar_lea.sflag [#allocation10], %s3139_s22  ;;  %s2301_s29 = int_to_ptr.vmem [resolvable:$true] %s2300_s29 }
0x12ae   : > { %s2839_s2 = scalar_lea.vmem %s2301_s29, 48  ;;  %s2986_s0 = smov [#allocation9]  }
0x12af   : > { %p2840_p4 = scmp.ne.s32.totalorder %s2301_s29, %s2839_s2  ;;  %s2843_s15 = sshll.u32 %s2986_s0, 4  ;;  %s2844_s15 = int_to_ptr.vmem [resolvable:$false] %s2843_s15 }
0x12b0   : > { %s2845_s30 = scalar_lea.vmem %s2844_s15, 96  ;;  %p2846_p8 = scmp.lt.s32.totalorder %s2301_s29, %s2844_s15 }
0x12b1   : > { %p2841_p5 = pnand %p2840_p4, %p4143_p13  ;;  %p2847_p10 = scmp.lt.s32.totalorder %s2845_s30, %s2839_s2 }
0x12b3   : > { %p2842_p7 = pneg %p2841_p5  ;;  %p2848_p0 = por %p2847_p10, %p2846_p8 }
0x12b5   : > { %p2849_p2 = pnand %p2848_p0, %p2842_p7 }
0x12b7   : > { %2852 = shalt.err (!%p2849_p2)
}
0x12b8   : > { %s2853_s19 = scalar_lea.hbm %s2298_s20, 48  ;;  %s2857_s28 = scalar_lea.hbm %s4040_s10, 96 }
0x12b9   : > { %p2854_p9 = scmp.ne.s32.totalorder %s2298_s20, %s2853_s19  ;;  %p2858_p6 = scmp.lt.s32.totalorder %s2298_s20, %s4040_s10 }
0x12ba   : > { %p2859_p11 = scmp.lt.s32.totalorder %s2857_s28, %s2853_s19 }
0x12bb   : > { %p2855_p1 = pnand %p2854_p9, %p4143_p13 }
0x12bc   : > { %p2860_p12 = por %p2859_p11, %p2858_p6 }
0x12bd   : > { %p2856_p3 = pneg %p2855_p1 }
0x12bf   : > { %p2861_p4 = pnand %p2860_p12, %p2856_p3 }
0x12c1   : > { %2864 = shalt.err (!%p2861_p4)
}
0x12c2   : > { %2667 = dma.vmem_to_hbm [thread:$0]  (%p4143_p13), %s2301_s29, 48, %s2298_s20, %s2239_s1  }
0x12c3   : > { %s4145_s2 = smul.u32 48, %s3153_s18  ;;  %s4146_s1 = scalar_lea.vmem [#allocation8], %s3760_s11 }
0x12c4   : > { %s2650_s26 = smul.u32 240, %s3139_s22  ;;  %s2228_s22 = sand.u32 1, %s3067_s17  }
0x12c5   : > { %s488_s30 = scalar_lea.vmem %s4037_s7, %s4145_s2  ;;  %s2659_s20 = smul.u32 3840, %s3067_s17 }
0x12c6   : > { %s3914_s18 = scalar_lea.vmem [#allocation6], %s2650_s26  ;;  %s2286_s19 = sshll.u32 %s4146_s1, 4  ;;  %s3963_s19 = int_to_ptr.vmem [resolvable:$true] %s2286_s19 }
0x12c7   : > { %s2269_s29 = sshll.u32 %s3914_s18, 4  ;;  %s3951_s27 = scalar_lea.hbm %s4038_s8, %s2659_s20  ;;  %s3953_s29 = int_to_ptr.vmem [resolvable:$true] %s2269_s29 }
0x12c8   : > { %s3961_s12 = scalar_lea.hbm %s4039_s9, %s3868_s21  ;;  %s3966_s2 = scalar_lea.sflag [#allocation7], %s2228_s22 }
0x12c9   : > { %s2865_s0 = scalar_lea.vmem %s3953_s29, 3840  ;;  %s2987_s15 = smov [#allocation6]  }
0x12ca   : > { %p2866_p5 = scmp.ne.s32.totalorder %s3953_s29, %s2865_s0 }
0x12cc   : > { %p2867_p7 = pnand %p2866_p5, %p4143_p13 }
0x12ce   : > { %p2868_p8 = pneg %p2867_p7 }
0x1337   : > { %v1769_v0 = vpop.f32.mrf.mxu0 }
0x1338   : > { %2130 = vst [vmem:[%s488_s30] sm:$0xff] %v1769_v0 }
0x1339   : > { %v1771_v5 = vpop.f32.mrf.mxu0 }
0x133a   : > { %2131 = vst [vmem:[%s488_s30 + $0x8] sm:$0xff] %v1771_v5 }
0x133b   : > { %v1775_v56 = vpop.f32.mrf.mxu0  ;;  %v2623_v57 = vpop.f32.mrf.mxu1 }
0x133c   : > { %2133 = vst [vmem:[%s488_s30 + $0x18] sm:$0x1] %v1775_v56  ;;  %2135 = vst [vmem:[%s488_s30 + $0x28] sm:$0x1] %v2623_v57 }
0x133d   : > { %v1777_v34 = vpop.f32.mrf.mxu0  ;;  %v1846_v4 = vpop.f32.mrf.mxu1 }
0x133e   : > { %2134 = vst [vmem:[%s488_s30 + $0x20] sm:$0x1] %v1777_v34  ;;  %2132 = vst [vmem:[%s488_s30 + $0x10] sm:$0xff] %v1846_v4  ;;  %s2869_s30 = sshll.u32 %s2987_s15, 4  ;;  %s2870_s30 = int_to_ptr.vmem [resolvable:$false] %s2869_s30 }
0x133f   : > { %v1977_v46 = vpop.f32.mrf.mxu1  ;;  %v2060_v59 = vpop.f32.mrf.mxu0  ;;  %s2871_s26 = scalar_lea.vmem %s2870_s30, 7680  ;;  %p2872_p10 = scmp.lt.s32.totalorder %s3953_s29, %s2870_s30 }
0x1340   : > { %2136 = vst [vmem:[%s3914_s18] sm:$0xff] %v1977_v46  ;;  %2138 = vst [vmem:[%s3914_s18 + $0x10] sm:$0xff] %v2060_v59  ;;  %p2873_p0 = scmp.lt.s32.totalorder %s2871_s26, %s2865_s0 }
0x1341   : > { %v1979_v37 = vpop.f32.mrf.mxu1  ;;  %v2628_v32 = vpop.f32.mrf.mxu0 }
0x1342   : > { %2137 = vst [vmem:[%s3914_s18 + $0x8] sm:$0xff] %v1979_v37  ;;  %p2874_p2 = por %p2873_p0, %p2872_p10 }
0x1343   : > { %v1981_v61 = vpop.f32.mrf.mxu1  ;;  %v2063_v43 = vpop.f32.mrf.mxu0 }
0x1344   : > { %2139 = vst [vmem:[%s3914_s18 + $0x18] sm:$0xff] %v1981_v61  ;;  %2141 = vst [vmem:[%s3914_s18 + $0x28] sm:$0xff] %v2063_v43  ;;  %p2875_p9 = pnand %p2874_p2, %p2868_p8 }
0x1345   : > { %v1983_v23 = vpop.f32.mrf.mxu1  ;;  %v2629_v33 = vpop.f32.mrf.mxu0 }
0x1346   : > { %2140 = vst [vmem:[%s3914_s18 + $0x20] sm:$0xff] %v1983_v23 }
0x1347   : > { %v1987_v51 = vpop.f32.mrf.mxu1  ;;  %v2068_v1 = vpop.f32.mrf.mxu0 }
0x1348   : > { %2142 = vst [vmem:[%s3914_s18 + $0x30] sm:$0xff] %v1987_v51  ;;  %2144 = vst [vmem:[%s3914_s18 + $0x40] sm:$0xff] %v2068_v1 }
0x1349   : > { %v1989_v25 = vpop.f32.mrf.mxu1  ;;  %v2632_v52 = vpop.f32.mrf.mxu0 }
0x134a   : > { %2143 = vst [vmem:[%s3914_s18 + $0x38] sm:$0xff] %v1989_v25 }
0x134b   : > { %v1991_v53 = vpop.f32.mrf.mxu1  ;;  %v2071_v54 = vpop.f32.mrf.mxu0 }
0x134c   : > { %2145 = vst [vmem:[%s3914_s18 + $0x48] sm:$0xff] %v1991_v53  ;;  %2147 = vst [vmem:[%s3914_s18 + $0x58] sm:$0xff] %v2071_v54 }
0x134d   : > { %v1993_v60 = vpop.f32.mrf.mxu1  ;;  %v2633_v26 = vpop.f32.mrf.mxu0 }
0x134e   : > { %2146 = vst [vmem:[%s3914_s18 + $0x50] sm:$0xff] %v1993_v60 }
0x134f   : > { %v1997_v35 = vpop.f32.mrf.mxu1  ;;  %v2076_v40 = vpop.f32.mrf.mxu0 }
0x1350   : > { %2148 = vst [vmem:[%s3914_s18 + $0x60] sm:$0xff] %v1997_v35  ;;  %2150 = vst [vmem:[%s3914_s18 + $0x70] sm:$0xff] %v2076_v40 }
0x1351   : > { %v1999_v41 = vpop.f32.mrf.mxu1  ;;  %v2636_v8 = vpop.f32.mrf.mxu0 }
0x1352   : > { %2149 = vst [vmem:[%s3914_s18 + $0x68] sm:$0xff] %v1999_v41 }
0x1353   : > { %v2001_v9 = vpop.f32.mrf.mxu1  ;;  %v2079_v10 = vpop.f32.mrf.mxu0 }
0x1354   : > { %2151 = vst [vmem:[%s3914_s18 + $0x78] sm:$0xff] %v2001_v9  ;;  %2153 = vst [vmem:[%s3914_s18 + $0x88] sm:$0xff] %v2079_v10 }
0x1355   : > { %v2003_v11 = vpop.f32.mrf.mxu1  ;;  %v2637_v42 = vpop.f32.mrf.mxu0 }
0x1356   : > { %2152 = vst [vmem:[%s3914_s18 + $0x80] sm:$0xff] %v2003_v11 }
0x1357   : > { %v2007_v2 = vpop.f32.mrf.mxu1  ;;  %v2084_v6 = vpop.f32.mrf.mxu0 }
0x1358   : > { %2154 = vst [vmem:[%s3914_s18 + $0x90] sm:$0xff] %v2007_v2  ;;  %2156 = vst [vmem:[%s3914_s18 + $0xa0] sm:$0xff] %v2084_v6 }
0x1359   : > { %v2009_v38 = vpop.f32.mrf.mxu1  ;;  %v2640_v31 = vpop.f32.mrf.mxu0 }
0x135a   : > { %2155 = vst [vmem:[%s3914_s18 + $0x98] sm:$0xff] %v2009_v38 }
0x135b   : > { %v2011_v45 = vpop.f32.mrf.mxu1  ;;  %v2087_v12 = vpop.f32.mrf.mxu0 }
0x135c   : > { %2157 = vst [vmem:[%s3914_s18 + $0xa8] sm:$0xff] %v2011_v45  ;;  %2159 = vst [vmem:[%s3914_s18 + $0xb8] sm:$0xff] %v2087_v12 }
0x135d   : > { %v2013_v29 = vpop.f32.mrf.mxu1  ;;  %v2641_v7 = vpop.f32.mrf.mxu0 }
0x135e   : > { %2158 = vst [vmem:[%s3914_s18 + $0xb0] sm:$0xff] %v2013_v29 }
0x135f   : > { %v2017_v13 = vpop.f32.mrf.mxu1  ;;  %v2092_v14 = vpop.f32.mrf.mxu0 }
0x1360   : > { %2160 = vst [vmem:[%s3914_s18 + $0xc0] sm:$0xff] %v2017_v13  ;;  %2162 = vst [vmem:[%s3914_s18 + $0xd0] sm:$0xff] %v2092_v14 }
0x1361   : > { %v2019_v15 = vpop.f32.mrf.mxu1  ;;  %v2644_v27 = vpop.f32.mrf.mxu0 }
0x1362   : > { %2161 = vst [vmem:[%s3914_s18 + $0xc8] sm:$0xff] %v2019_v15 }
0x1363   : > { %v2021_v16 = vpop.f32.mrf.mxu1  ;;  %v2095_v17 = vpop.f32.mrf.mxu0 }
0x1364   : > { %2163 = vst [vmem:[%s3914_s18 + $0xd8] sm:$0xff] %v2021_v16  ;;  %2165 = vst [vmem:[%s3914_s18 + $0xe8] sm:$0xff] %v2095_v17 }
0x1365   : > { %v2023_v21 = vpop.f32.mrf.mxu1  ;;  %v2645_v18 = vpop.f32.mrf.mxu0 }
0x1366   : > { %2164 = vst [vmem:[%s3914_s18 + $0xe0] sm:$0xff] %v2023_v21 }
0x1367   : > { %2878 = shalt.err (!%p2875_p9)
}
0x1368   : > { %s2879_s21 = scalar_lea.hbm %s3951_s27, 3840  ;;  %s2883_s20 = scalar_lea.hbm %s4038_s8, 7680 }
0x1369   : > { %p2880_p1 = scmp.ne.s32.totalorder %s3951_s27, %s2879_s21  ;;  %p2884_p11 = scmp.lt.s32.totalorder %s3951_s27, %s4038_s8 }
0x136a   : > { %p2885_p12 = scmp.lt.s32.totalorder %s2883_s20, %s2879_s21 }
0x136b   : > { %p2881_p3 = pnand %p2880_p1, %p4143_p13 }
0x136c   : > { %p2886_p4 = por %p2885_p12, %p2884_p11 }
0x136d   : > { %p2882_p6 = pneg %p2881_p3 }
0x136f   : > { %p2887_p5 = pnand %p2886_p4, %p2882_p6 }
0x1371   : > { %2890 = shalt.err (!%p2887_p5)
}
0x1372   : > { %s2988_s28 = smov 384   ;;  %s2989_s17 = smov 24  }
0x1373   : > { %2665 = dma.vmem_to_hbm [thread:$0]  (%p4143_p13), %s3953_s29, 3840, %s3951_s27, %s3966_s2, %s2988_s28, %s2988_s28, %s2989_s17  }
0x1374   : > { %s2891_s11 = scalar_lea.vmem %s3963_s19, 48  ;;  %s2990_s0 = smov [#allocation8]  }
0x1375   : > { %p2892_p7 = scmp.ne.s32.totalorder %s3963_s19, %s2891_s11  ;;  %s2895_s15 = sshll.u32 %s2990_s0, 4  ;;  %s2896_s15 = int_to_ptr.vmem [resolvable:$false] %s2895_s15 }
0x1376   : > { %s2897_s30 = scalar_lea.vmem %s2896_s15, 96  ;;  %p2898_p0 = scmp.lt.s32.totalorder %s3963_s19, %s2896_s15 }
0x1377   : > { %p2893_p8 = pnand %p2892_p7, %p4143_p13  ;;  %p2899_p2 = scmp.lt.s32.totalorder %s2897_s30, %s2891_s11 }
0x1379   : > { %p2894_p10 = pneg %p2893_p8  ;;  %p2900_p9 = por %p2899_p2, %p2898_p0 }
0x137b   : > { %p2901_p1 = pnand %p2900_p9, %p2894_p10 }
0x137d   : > { %2904 = shalt.err (!%p2901_p1)
}
0x137e   : > { %s2905_s26 = scalar_lea.hbm %s3961_s12, 48  ;;  %s2909_s21 = scalar_lea.hbm %s4039_s9, 96 }
0x137f   : > { %p2906_p3 = scmp.ne.s32.totalorder %s3961_s12, %s2905_s26  ;;  %p2910_p12 = scmp.lt.s32.totalorder %s3961_s12, %s4039_s9 }
0x1380   : > { %p2911_p4 = scmp.lt.s32.totalorder %s2909_s21, %s2905_s26 }
0x1381   : > { %p2907_p6 = pnand %p2906_p3, %p4143_p13 }
0x1382   : > { %p2912_p5 = por %p2911_p4, %p2910_p12 }
0x1383   : > { %p2908_p11 = pneg %p2907_p6 }
0x1385   : > { %p2913_p7 = pnand %p2912_p5, %p2908_p11 }
0x1387   : > { %2916 = shalt.err (!%p2913_p7)
}
0x1388   : > { %2666 = dma.vmem_to_hbm [thread:$0]  (%p4143_p13), %s3963_s19, 48, %s3961_s12, %s3966_s2  }
0x1389 PF: > { %s2312_s20 = sand.u32 1, %s2951_s13   ;;  %p4147_p8 = scmp.ne.s32.totalorder %s4061_s25, 0 }
0x138a   : > { %p4148_p10 = scmp.ge.s32.totalorder %s2963_s16, 2  ;;  %s2313_s1 = scalar_lea.sflag [#allocation4], %s2312_s20 }
0x138c   : > { %p2677_p0 = pnand %p4148_p10, %p4147_p8 }
0x138e   : > { %p2678_p2 = pneg %p2677_p0 }
0x1390   : > { %2938 = dma.done.wait (%p2678_p2), %s2313_s1, 48  }
0x1391   : > { %2940 = vsyncadd (%p2678_p2), %s2313_s1, 4294967248  ;;  %s4149_s23 = sadd.s32 4294967294, %s2963_s16  }
0x1392   : > { %s2329_s28 = sand.u32 1, %s4149_s23  }
0x1393   : > { %s2330_s24 = scalar_lea.sflag [#allocation7], %s2329_s28 }
0x1394   : > { %2942 = dma.done.wait (%p2678_p2), %s2330_s24, 3888  }
0x1395   : > { %2944 = vsyncadd (%p2678_p2), %s2330_s24, 4294963408  ;;  %s2348_s17 = scalar_lea.sflag [#allocation10], %s2312_s20 }
0x1396   : > { %2946 = dma.done.wait (%p2678_p2), %s2348_s17, 48  }
0x1397   : > { %2948 = vsyncadd (%p2678_p2), %s2348_s17, 4294967248  ;;  %s4150_s16 = sld [smem:[#allocation16_spill]]  ;;  %s4153_s13 = smov %s2955_s14 }
0x1398   : > { %s4151_s19 = sld [smem:[#allocation15_spill]] }
0x1399   : > { %s4152_s15 = sld [smem:[#allocation17_spill]] }
0x139d   : > { %p30_p13 = scmp.ge.s32.totalorder %s4150_s16, 4  }
0x139e   : > { %s4154_s14 = smov %s4151_s19 }
0x139f   :  { %32 = sbr.rel (!%p30_p13) target bundleno = 13 (0xd), region = 162 }
0x13a4   :  { %2353 = vsyncpa [#allocation3], 1 }
0x13a5   :  { %2355 = vsyncpa [#allocation3 + $0x1], 1 }
0x13a6   :  { %2356 = vsyncpa [#allocation4], 1 }
0x13a7   :  { %2358 = vsyncpa [#allocation4 + $0x1], 1 }
0x13a8   :  { %2359 = vsyncpa [#allocation7], 1 }
0x13a9   :  { %2361 = vsyncpa [#allocation7 + $0x1], 1 }
0x13aa   :  { %2362 = vsyncpa [#allocation10], 1 }
0x13ab   :  { %2364 = vsyncpa [#allocation10 + $0x1], 1 }

</bundles_post_ra>
